<compile_context>
chip_gen: v6e
topology: v6e:2x2x1
jax: 0.10.0
libtpu: 0.0.40
codegen_flags: <defaults>
</compile_context>

<pallas_src>
import functools

import jax
import jax.numpy as jnp
from jax.experimental import pallas as pl
from jax.experimental.pallas import tpu as pltpu


def _round_up(x, m):
    return (x + m - 1) // m * m


# ----------------------------------------------------------------------------
# Kernel: relu-MLP with folded BN, lane-dense (128-padded) widths, packed bias.
# bias rows: 0 -> fused proj bias (d2p), 1 -> b1 (d2p), 2 -> b2 (d2p),
#            3 -> b3 (d1p), 4 -> b4 (ncp)
# ----------------------------------------------------------------------------
def _mlp_kernel(xt_ref, xi_ref, wt_ref, wi_ref, w1_ref, w2_ref, w3_ref,
                w4_ref, b_ref, out_ref, *, d2p, d1p, ncp):
    def dot(a, w_ref):
        # bf16 x bf16 on the MXU, f32 accumulation.
        return jnp.dot(a, w_ref[...], preferred_element_type=jnp.float32)

    def relu_bf16(h):
        # bias-add / ReLU in f32, then a single cast so the next layer's live
        # intermediate is half-width bf16.
        return jnp.maximum(h, 0.0).astype(jnp.bfloat16)

    xt = xt_ref[...].astype(jnp.bfloat16)
    xi = xi_ref[...].astype(jnp.bfloat16)

    # Fused (text|image) projection + folded BN0: two full-width dots over
    # block-diagonal weights == matmul of the concatenated input (no concat).
    x = relu_bf16(dot(xt, wt_ref) + dot(xi, wi_ref) + b_ref[0:1, :d2p])
    # Linear(2H,2H) + folded BN1 -> ReLU
    x = relu_bf16(dot(x, w1_ref) + b_ref[1:2, :d2p])
    # Linear(2H,2H) + folded BN2 -> ReLU
    x = relu_bf16(dot(x, w2_ref) + b_ref[2:3, :d2p])
    # Linear(2H,H) + folded BN3 -> ReLU
    x = relu_bf16(dot(x, w3_ref) + b_ref[3:4, :d1p])
    # Final Linear(H, ncp) -> lane-dense f32 logits (unmasked stores).
    out_ref[...] = dot(x, w4_ref) + b_ref[4:5, :ncp]


# ----------------------------------------------------------------------------
# Plain-JAX glue: BN/bias folding, 128-lane padding, bias packing, bf16 cast.
# All padding is exact: padded weight rows/cols and bias lanes are zero, and
# relu(0) = 0, so padded lanes never contribute to real outputs.
# ----------------------------------------------------------------------------
def fold_and_pack(p, eps=1e-5):
    H = p["wt"].shape[1]
    td, idim = p["wt"].shape[0], p["wi"].shape[0]
    num_classes = p["w4"].shape[1]
    d2, d1 = 2 * H, H
    d2p = _round_up(d2, 128)
    d1p = _round_up(d1, 128)
    ncp = _round_up(max(num_classes, 1), 128)

    def scale_shift(g, b, m, v):
        s = g / jnp.sqrt(v + eps)
        return s, b - m * s

    s0, h0 = scale_shift(*p["bn0"])
    s1, h1 = scale_shift(*p["bn1"])
    s2, h2 = scale_shift(*p["bn2"])
    s3, h3 = scale_shift(*p["bn3"])

    # Fold BN0 into the two projections.  Store each projection full-width
    # (in_dim, d2p): text occupies output lanes [0:H], image lanes [H:2H];
    # all other lanes are zero -> sum of the two dots == concat + blockdiag.
    wt = p["wt"] * s0[:H]
    bt = p["bt"] * s0[:H] + h0[:H]
    wi = p["wi"] * s0[H:]
    bi = p["bi"] * s0[H:] + h0[H:]
    wt_f = jnp.zeros((td, d2p), jnp.float32).at[:, :H].set(wt)
    wi_f = jnp.zeros((idim, d2p), jnp.float32).at[:, H:d2].set(wi)
    b0 = jnp.zeros((d2p,), jnp.float32).at[:d2].set(jnp.concatenate([bt, bi]))

    # Fold BN(i) into Linear(i), zero-pad to 128-multiples.
    # TODO(synk): if bf16 rounding of w*s hurts accuracy for real checkpoints
    # (tiny running variance -> huge scale), keep the per-channel scale in the
    # f32 bias operand and apply it as one f32 VPU multiply instead.
    def fold_pad(w, b, s, h, rows, cols):
        w = w * s
        b = b * s + h
        wp = jnp.zeros((rows, cols), jnp.float32).at[:w.shape[0], :w.shape[1]].set(w)
        bp = jnp.zeros((cols,), jnp.float32).at[:b.shape[0]].set(b)
        return wp, bp

    w1, b1 = fold_pad(p["w1"], p["b1"], s1, h1, d2p, d2p)
    w2, b2 = fold_pad(p["w2"], p["b2"], s2, h2, d2p, d2p)
    w3, b3 = fold_pad(p["w3"], p["b3"], s3, h3, d2p, d1p)
    # Final layer (no BN), padded to 128 output lanes.
    w4 = jnp.zeros((d1p, ncp), jnp.float32).at[:H, :num_classes].set(p["w4"])
    b4 = jnp.zeros((ncp,), jnp.float32).at[:num_classes].set(p["b4"])

    # Pack all bias vectors into a single lane-dense f32 operand (8 sublanes).
    bmax = max(d2p, d1p, ncp, 128)
    biases = jnp.zeros((8, bmax), jnp.float32)
    biases = biases.at[0, :d2p].set(b0)
    biases = biases.at[1, :d2p].set(b1)
    biases = biases.at[2, :d2p].set(b2)
    biases = biases.at[3, :d1p].set(b3)
    biases = biases.at[4, :ncp].set(b4)

    bf16 = lambda w: w.astype(jnp.bfloat16)
    return dict(
        wt=bf16(wt_f), wi=bf16(wi_f), w1=bf16(w1), w2=bf16(w2), w3=bf16(w3),
        w4=bf16(w4), biases=biases,
        num_classes=num_classes, d2p=d2p, d1p=d1p, ncp=ncp,
    )


def multimodal_classifier(text_emb, image_emb, kp):
    """Fused forward pass. Batch is tiled over a parallel grid axis; the
    BN/bias-folded bf16 weights stay resident (single-buffered) across steps."""
    B, td = text_emb.shape
    idim = image_emb.shape[1]
    d2p, d1p, ncp = kp["d2p"], kp["d1p"], kp["ncp"]

    # Chip query (VMEM size) with a conservative v7x fallback.
    try:
        phys_vmem = int(pltpu.get_tpu_info().vmem_capacity_bytes)
    except Exception:  # pragma: no cover - info query unavailable
        phys_vmem = 64 << 20

    # ---- Batch tiling ------------------------------------------------------
    # * tile cap from VMEM size (2048 on 128 MiB chips, 1024 on v7x's 64 MiB)
    # * >= 2 grid steps when B > 16 so v7x's two TensorCores both get work
    # * tile_b = round_up(cdiv(B, n_tiles), 16): 16-aligned (bf16 sublane
    #   packing), minimal tail padding.
    cap = 2048 if phys_vmem > (96 << 20) else 1024
    n_tiles = pl.cdiv(B, cap)
    if B > 16:
        n_tiles = max(n_tiles, 2)
    n_tiles = max(n_tiles, 1)
    tile_b = _round_up(pl.cdiv(B, n_tiles), 16)
    b_pad = _round_up(B, tile_b)
    if b_pad != B:
        pad = ((0, b_pad - B), (0, 0))
        text_emb = jnp.pad(text_emb, pad)
        image_emb = jnp.pad(image_emb, pad)
    grid = (b_pad // tile_b,)

    weights = (kp["wt"], kp["wi"], kp["w1"], kp["w2"], kp["w3"], kp["w4"],
               kp["biases"])

    # Explicit VMEM budget: weights (<=2 copies in the worst case), double-
    # buffered I/O tiles, a few live intermediates, plus headroom; clamped to
    # 75% of physical VMEM (leaves compiler scratch room on v7x's 64 MiB).
    w_bytes = sum(int(a.size) * a.dtype.itemsize for a in weights)
    io_bytes = 2 * tile_b * ((td + idim) * text_emb.dtype.itemsize + ncp * 4)
    interm_bytes = 4 * tile_b * d2p * 4
    vmem_limit = int(min(2 * w_bytes + io_bytes + interm_bytes + (8 << 20),
                         (phys_vmem * 3) // 4))

    kernel = functools.partial(_mlp_kernel, d2p=d2p, d1p=d1p, ncp=ncp)

    def run(weight_pipeline_mode):
        def whole(arr):
            if weight_pipeline_mode is None:
                return pl.BlockSpec(arr.shape, lambda i: (0, 0))
            return pl.BlockSpec(arr.shape, lambda i: (0, 0),
                                pipeline_mode=weight_pipeline_mode)

        return pl.pallas_call(
            kernel,
            out_shape=jax.ShapeDtypeStruct((b_pad, ncp), jnp.float32),
            grid=grid,
            in_specs=[
                pl.BlockSpec((tile_b, td), lambda i: (i, 0)),
                pl.BlockSpec((tile_b, idim), lambda i: (i, 0)),
                *[whole(w) for w in weights],
            ],
            out_specs=pl.BlockSpec((tile_b, ncp), lambda i: (i, 0)),
            compiler_params=pltpu.CompilerParams(
                dimension_semantics=("parallel",),
                vmem_limit_bytes=vmem_limit,
            ),
        )(text_emb, image_emb, *weights)

    try:
        # Grid-invariant operands: single-buffered (nothing to pipeline).
        out = run(pl.Buffered(1))
    except Exception:
        # TODO(synk): drop this fallback once pipeline_mode=pl.Buffered(1) on
        # pallas_call BlockSpecs is guaranteed on all deployed jax versions.
        out = run(None)

    return out[:B, : kp["num_classes"]]


# ----------------------------------------------------------------------------
# Parameter construction (PyTorch layout transposed: weights are (in, out)) and
# a pure-JAX reference of the original module (eval mode).
# ----------------------------------------------------------------------------
def init_params(key, text_dim, image_dim, hidden_dim, num_classes):
    H, H2 = hidden_dim, hidden_dim * 2
    keys = iter(jax.random.split(key, 32))

    def linear(fin, fout):
        w = jax.random.normal(next(keys), (fin, fout), jnp.float32) * 0.05
        b = jax.random.normal(next(keys), (fout,), jnp.float32) * 0.05
        return w, b

    def bn(f):
        g = 1.0 + 0.1 * jax.random.normal(next(keys), (f,), jnp.float32)
        b = 0.1 * jax.random.normal(next(keys), (f,), jnp.float32)
        m = 0.1 * jax.random.normal(next(keys), (f,), jnp.float32)
        v = jnp.abs(1.0 + 0.1 * jax.random.normal(next(keys), (f,), jnp.float32))
        return (g, b, m, v)

    p = {}
    p["wt"], p["bt"] = linear(text_dim, H)
    p["wi"], p["bi"] = linear(image_dim, H)
    p["bn0"] = bn(H2)
    p["w1"], p["b1"] = linear(H2, H2)
    p["bn1"] = bn(H2)
    p["w2"], p["b2"] = linear(H2, H2)
    p["bn2"] = bn(H2)
    p["w3"], p["b3"] = linear(H2, H)
    p["bn3"] = bn(H)
    p["w4"], p["b4"] = linear(H, num_classes)
    return p


def reference_forward(text_emb, image_emb, p, eps=1e-5):
    def bn(x, g, b, m, v):
        return (x - m) / jnp.sqrt(v + eps) * g + b

    t = text_emb @ p["wt"] + p["bt"]
    i = image_emb @ p["wi"] + p["bi"]
    x = jnp.concatenate([t, i], axis=1)
    x = jax.nn.relu(bn(x, *p["bn0"]))                      # dropout = identity
    x = jax.nn.relu(bn(x @ p["w1"] + p["b1"], *p["bn1"]))
    x = jax.nn.relu(bn(x @ p["w2"] + p["b2"], *p["bn2"]))
    x = jax.nn.relu(bn(x @ p["w3"] + p["b3"], *p["bn3"]))
    return x @ p["w4"] + p["b4"]


if __name__ == "__main__":
    # Small shapes consistent with the module's forward.
    B, TEXT_DIM, IMAGE_DIM, HIDDEN, NUM_CLASSES = 8, 32, 32, 32, 3

    key = jax.random.PRNGKey(0)
    k_text, k_img, k_params = jax.random.split(key, 3)
    text_emb = jax.random.normal(k_text, (B, TEXT_DIM), jnp.float32)
    image_emb = jax.random.normal(k_img, (B, IMAGE_DIM), jnp.float32)

    raw_params = init_params(k_params, TEXT_DIM, IMAGE_DIM, HIDDEN, NUM_CLASSES)
    kernel_params = fold_and_pack(raw_params)

    logits = multimodal_classifier(text_emb, image_emb, kernel_params)
    logits = jax.block_until_ready(logits)

    ref = reference_forward(text_emb, image_emb, raw_params)
    assert logits.shape == (B, NUM_CLASSES)
    # Loosened tolerance only because weights are bf16 on the MXU (f32 accum).
    max_err = float(jnp.max(jnp.abs(logits - ref)))
    assert jnp.allclose(logits, ref, atol=5e-2, rtol=5e-2), (
        f"mismatch vs JAX reference, max abs err {max_err:.4f}"
    )

    print("KERNEL_OK")
</pallas_src>

<mosaic_0001>
module attributes {stable_mosaic.version = 11 : i64} {
  func.func @_mlp_kernel(%arg0: i32, %arg1: memref<16x32xf32, #tpu.memory_space<vmem>>, %arg2: memref<16x32xf32, #tpu.memory_space<vmem>>, %arg3: memref<32x128xbf16, #tpu.memory_space<vmem>>, %arg4: memref<32x128xbf16, #tpu.memory_space<vmem>>, %arg5: memref<128x128xbf16, #tpu.memory_space<vmem>>, %arg6: memref<128x128xbf16, #tpu.memory_space<vmem>>, %arg7: memref<128x128xbf16, #tpu.memory_space<vmem>>, %arg8: memref<128x128xbf16, #tpu.memory_space<vmem>>, %arg9: memref<8x128xf32, #tpu.memory_space<vmem>>, %arg10: memref<16x128xf32, #tpu.memory_space<vmem>>) attributes {dimension_semantics = [#tpu.dimension_semantics<parallel>], iteration_bounds = array<i64: 1>, scalar_prefetch = 0 : i64, scratch_operands = 0 : i64, tpu.core_type = #tpu.core_type<tc>, window_params = [{transform_indices = @transform_0, window_bounds = array<i64: 16, 32>}, {transform_indices = @transform_1, window_bounds = array<i64: 16, 32>}, {pipeline_mode = #tpu.pipeline_mode<synchronous>, transform_indices = @transform_2, window_bounds = array<i64: 32, 128>}, {pipeline_mode = #tpu.pipeline_mode<synchronous>, transform_indices = @transform_3, window_bounds = array<i64: 32, 128>}, {pipeline_mode = #tpu.pipeline_mode<synchronous>, transform_indices = @transform_4, window_bounds = array<i64: 128, 128>}, {pipeline_mode = #tpu.pipeline_mode<synchronous>, transform_indices = @transform_5, window_bounds = array<i64: 128, 128>}, {pipeline_mode = #tpu.pipeline_mode<synchronous>, transform_indices = @transform_6, window_bounds = array<i64: 128, 128>}, {pipeline_mode = #tpu.pipeline_mode<synchronous>, transform_indices = @transform_7, window_bounds = array<i64: 128, 128>}, {pipeline_mode = #tpu.pipeline_mode<synchronous>, transform_indices = @transform_8, window_bounds = array<i64: 8, 128>}, {transform_indices = @transform_9, window_bounds = array<i64: 16, 128>}]} {
    %c0 = arith.constant 0 : index
    %c0_0 = arith.constant 0 : index
    %0 = vector.load %arg1[%c0, %c0_0] : memref<16x32xf32, #tpu.memory_space<vmem>>, vector<16x32xf32>
    %1 = arith.truncf %0 : vector<16x32xf32> to vector<16x32xbf16>
    %c0_1 = arith.constant 0 : index
    %c0_2 = arith.constant 0 : index
    %2 = vector.load %arg2[%c0_1, %c0_2] : memref<16x32xf32, #tpu.memory_space<vmem>>, vector<16x32xf32>
    %3 = arith.truncf %2 : vector<16x32xf32> to vector<16x32xbf16>
    %c0_3 = arith.constant 0 : index
    %c0_4 = arith.constant 0 : index
    %4 = vector.load %arg3[%c0_3, %c0_4] : memref<32x128xbf16, #tpu.memory_space<vmem>>, vector<32x128xbf16>
    %cst = arith.constant dense<0.000000e+00> : vector<16x128xf32>
    %5 = tpu.matmul %1, %4, %cst {dimension_numbers = #tpu.dot_dimension_numbers<[1], [0], [0], [1], [0, 0, 1, 1], [], []>} : vector<16x32xbf16>, vector<32x128xbf16>, vector<16x128xf32> -> vector<16x128xf32>
    %c0_5 = arith.constant 0 : index
    %c0_6 = arith.constant 0 : index
    %6 = vector.load %arg4[%c0_5, %c0_6] : memref<32x128xbf16, #tpu.memory_space<vmem>>, vector<32x128xbf16>
    %cst_7 = arith.constant dense<0.000000e+00> : vector<16x128xf32>
    %7 = tpu.matmul %3, %6, %cst_7 {dimension_numbers = #tpu.dot_dimension_numbers<[1], [0], [0], [1], [0, 0, 1, 1], [], []>} : vector<16x32xbf16>, vector<32x128xbf16>, vector<16x128xf32> -> vector<16x128xf32>
    %8 = arith.addf %5, %7 : vector<16x128xf32>
    %c0_8 = arith.constant 0 : index
    %c0_9 = arith.constant 0 : index
    %9 = vector.load %arg9[%c0_8, %c0_9] : memref<8x128xf32, #tpu.memory_space<vmem>>, vector<1x128xf32>
    %10 = vector.broadcast %9 : vector<1x128xf32> to vector<16x128xf32>
    %11 = arith.addf %8, %10 : vector<16x128xf32>
    %cst_10 = arith.constant 0.000000e+00 : f32
    %12 = vector.broadcast %cst_10 : f32 to vector<16x128xf32>
    %13 = arith.maximumf %11, %12 : vector<16x128xf32>
    %14 = arith.truncf %13 : vector<16x128xf32> to vector<16x128xbf16>
    %c0_11 = arith.constant 0 : index
    %c0_12 = arith.constant 0 : index
    %15 = vector.load %arg5[%c0_11, %c0_12] : memref<128x128xbf16, #tpu.memory_space<vmem>>, vector<128x128xbf16>
    %cst_13 = arith.constant dense<0.000000e+00> : vector<16x128xf32>
    %16 = tpu.matmul %14, %15, %cst_13 {dimension_numbers = #tpu.dot_dimension_numbers<[1], [0], [0], [1], [0, 0, 1, 1], [], []>} : vector<16x128xbf16>, vector<128x128xbf16>, vector<16x128xf32> -> vector<16x128xf32>
    %c1 = arith.constant 1 : index
    %c0_14 = arith.constant 0 : index
    %17 = vector.load %arg9[%c1, %c0_14] : memref<8x128xf32, #tpu.memory_space<vmem>>, vector<1x128xf32>
    %18 = vector.broadcast %17 : vector<1x128xf32> to vector<16x128xf32>
    %19 = arith.addf %16, %18 : vector<16x128xf32>
    %cst_15 = arith.constant 0.000000e+00 : f32
    %20 = vector.broadcast %cst_15 : f32 to vector<16x128xf32>
    %21 = arith.maximumf %19, %20 : vector<16x128xf32>
    %22 = arith.truncf %21 : vector<16x128xf32> to vector<16x128xbf16>
    %c0_16 = arith.constant 0 : index
    %c0_17 = arith.constant 0 : index
    %23 = vector.load %arg6[%c0_16, %c0_17] : memref<128x128xbf16, #tpu.memory_space<vmem>>, vector<128x128xbf16>
    %cst_18 = arith.constant dense<0.000000e+00> : vector<16x128xf32>
    %24 = tpu.matmul %22, %23, %cst_18 {dimension_numbers = #tpu.dot_dimension_numbers<[1], [0], [0], [1], [0, 0, 1, 1], [], []>} : vector<16x128xbf16>, vector<128x128xbf16>, vector<16x128xf32> -> vector<16x128xf32>
    %c2 = arith.constant 2 : index
    %c0_19 = arith.constant 0 : index
    %25 = vector.load %arg9[%c2, %c0_19] : memref<8x128xf32, #tpu.memory_space<vmem>>, vector<1x128xf32>
    %26 = vector.broadcast %25 : vector<1x128xf32> to vector<16x128xf32>
    %27 = arith.addf %24, %26 : vector<16x128xf32>
    %cst_20 = arith.constant 0.000000e+00 : f32
    %28 = vector.broadcast %cst_20 : f32 to vector<16x128xf32>
    %29 = arith.maximumf %27, %28 : vector<16x128xf32>
    %30 = arith.truncf %29 : vector<16x128xf32> to vector<16x128xbf16>
    %c0_21 = arith.constant 0 : index
    %c0_22 = arith.constant 0 : index
    %31 = vector.load %arg7[%c0_21, %c0_22] : memref<128x128xbf16, #tpu.memory_space<vmem>>, vector<128x128xbf16>
    %cst_23 = arith.constant dense<0.000000e+00> : vector<16x128xf32>
    %32 = tpu.matmul %30, %31, %cst_23 {dimension_numbers = #tpu.dot_dimension_numbers<[1], [0], [0], [1], [0, 0, 1, 1], [], []>} : vector<16x128xbf16>, vector<128x128xbf16>, vector<16x128xf32> -> vector<16x128xf32>
    %c3 = arith.constant 3 : index
    %c0_24 = arith.constant 0 : index
    %33 = vector.load %arg9[%c3, %c0_24] : memref<8x128xf32, #tpu.memory_space<vmem>>, vector<1x128xf32>
    %34 = vector.broadcast %33 : vector<1x128xf32> to vector<16x128xf32>
    %35 = arith.addf %32, %34 : vector<16x128xf32>
    %cst_25 = arith.constant 0.000000e+00 : f32
    %36 = vector.broadcast %cst_25 : f32 to vector<16x128xf32>
    %37 = arith.maximumf %35, %36 : vector<16x128xf32>
    %38 = arith.truncf %37 : vector<16x128xf32> to vector<16x128xbf16>
    %c0_26 = arith.constant 0 : index
    %c0_27 = arith.constant 0 : index
    %39 = vector.load %arg8[%c0_26, %c0_27] : memref<128x128xbf16, #tpu.memory_space<vmem>>, vector<128x128xbf16>
    %cst_28 = arith.constant dense<0.000000e+00> : vector<16x128xf32>
    %40 = tpu.matmul %38, %39, %cst_28 {dimension_numbers = #tpu.dot_dimension_numbers<[1], [0], [0], [1], [0, 0, 1, 1], [], []>} : vector<16x128xbf16>, vector<128x128xbf16>, vector<16x128xf32> -> vector<16x128xf32>
    %c4 = arith.constant 4 : index
    %c0_29 = arith.constant 0 : index
    %41 = vector.load %arg9[%c4, %c0_29] : memref<8x128xf32, #tpu.memory_space<vmem>>, vector<1x128xf32>
    %42 = vector.broadcast %41 : vector<1x128xf32> to vector<16x128xf32>
    %43 = arith.addf %40, %42 : vector<16x128xf32>
    %c0_30 = arith.constant 0 : index
    %c0_31 = arith.constant 0 : index
    %44 = vector.load %arg10[%c0_30, %c0_31] : memref<16x128xf32, #tpu.memory_space<vmem>>, vector<16x128xf32>
    tpu.vector_store %arg10[%c0_30, %c0_31], %43 {strides = array<i32>} : memref<16x128xf32, #tpu.memory_space<vmem>>, vector<16x128xf32>,
    return
  }
  func.func @transform_0(%arg0: i32) -> (i32, i32) {
    %c0_i32 = arith.constant 0 : i32
    %c0_i32_0 = arith.constant 0 : i32
    return %arg0, %c0_i32 : i32, i32
  }
  func.func @transform_1(%arg0: i32) -> (i32, i32) {
    %c0_i32 = arith.constant 0 : i32
    %c0_i32_0 = arith.constant 0 : i32
    return %arg0, %c0_i32 : i32, i32
  }
  func.func @transform_2(%arg0: i32) -> (i32, i32) {
    %c0_i32 = arith.constant 0 : i32
    %c0_i32_0 = arith.constant 0 : i32
    %c0_i32_1 = arith.constant 0 : i32
    return %c0_i32, %c0_i32_0 : i32, i32
  }
  func.func @transform_3(%arg0: i32) -> (i32, i32) {
    %c0_i32 = arith.constant 0 : i32
    %c0_i32_0 = arith.constant 0 : i32
    %c0_i32_1 = arith.constant 0 : i32
    return %c0_i32, %c0_i32_0 : i32, i32
  }
  func.func @transform_4(%arg0: i32) -> (i32, i32) {
    %c0_i32 = arith.constant 0 : i32
    %c0_i32_0 = arith.constant 0 : i32
    %c0_i32_1 = arith.constant 0 : i32
    return %c0_i32, %c0_i32_0 : i32, i32
  }
  func.func @transform_5(%arg0: i32) -> (i32, i32) {
    %c0_i32 = arith.constant 0 : i32
    %c0_i32_0 = arith.constant 0 : i32
    %c0_i32_1 = arith.constant 0 : i32
    return %c0_i32, %c0_i32_0 : i32, i32
  }
  func.func @transform_6(%arg0: i32) -> (i32, i32) {
    %c0_i32 = arith.constant 0 : i32
    %c0_i32_0 = arith.constant 0 : i32
    %c0_i32_1 = arith.constant 0 : i32
    return %c0_i32, %c0_i32_0 : i32, i32
  }
  func.func @transform_7(%arg0: i32) -> (i32, i32) {
    %c0_i32 = arith.constant 0 : i32
    %c0_i32_0 = arith.constant 0 : i32
    %c0_i32_1 = arith.constant 0 : i32
    return %c0_i32, %c0_i32_0 : i32, i32
  }
  func.func @transform_8(%arg0: i32) -> (i32, i32) {
    %c0_i32 = arith.constant 0 : i32
    %c0_i32_0 = arith.constant 0 : i32
    %c0_i32_1 = arith.constant 0 : i32
    return %c0_i32, %c0_i32_0 : i32, i32
  }
  func.func @transform_9(%arg0: i32) -> (i32, i32) {
    %c0_i32 = arith.constant 0 : i32
    %c0_i32_0 = arith.constant 0 : i32
    return %arg0, %c0_i32 : i32, i32
  }
}

module attributes {stable_mosaic.version = 11 : i64} {
  func.func @_mlp_kernel(%arg0: i32, %arg1: memref<16x32xf32, #tpu.memory_space<vmem>>, %arg2: memref<16x32xf32, #tpu.memory_space<vmem>>, %arg3: memref<32x128xbf16, #tpu.memory_space<vmem>>, %arg4: memref<32x128xbf16, #tpu.memory_space<vmem>>, %arg5: memref<128x128xbf16, #tpu.memory_space<vmem>>, %arg6: memref<128x128xbf16, #tpu.memory_space<vmem>>, %arg7: memref<128x128xbf16, #tpu.memory_space<vmem>>, %arg8: memref<128x128xbf16, #tpu.memory_space<vmem>>, %arg9: memref<8x128xf32, #tpu.memory_space<vmem>>, %arg10: memref<16x128xf32, #tpu.memory_space<vmem>>) attributes {dimension_semantics = [#tpu.dimension_semantics<parallel>], iteration_bounds = array<i64: 1>, scalar_prefetch = 0 : i64, scratch_operands = 0 : i64, tpu.core_type = #tpu.core_type<tc>, window_params = [{transform_indices = @transform_0, window_bounds = array<i64: 16, 32>}, {transform_indices = @transform_1, window_bounds = array<i64: 16, 32>}, {pipeline_mode = #tpu.pipeline_mode<synchronous>, transform_indices = @transform_2, window_bounds = array<i64: 32, 128>}, {pipeline_mode = #tpu.pipeline_mode<synchronous>, transform_indices = @transform_3, window_bounds = array<i64: 32, 128>}, {pipeline_mode = #tpu.pipeline_mode<synchronous>, transform_indices = @transform_4, window_bounds = array<i64: 128, 128>}, {pipeline_mode = #tpu.pipeline_mode<synchronous>, transform_indices = @transform_5, window_bounds = array<i64: 128, 128>}, {pipeline_mode = #tpu.pipeline_mode<synchronous>, transform_indices = @transform_6, window_bounds = array<i64: 128, 128>}, {pipeline_mode = #tpu.pipeline_mode<synchronous>, transform_indices = @transform_7, window_bounds = array<i64: 128, 128>}, {pipeline_mode = #tpu.pipeline_mode<synchronous>, transform_indices = @transform_8, window_bounds = array<i64: 8, 128>}, {transform_indices = @transform_9, window_bounds = array<i64: 16, 128>}]} {
    %c0 = arith.constant 0 : index
    %c0_0 = arith.constant 0 : index
    %0 = vector.load %arg1[%c0, %c0_0] : memref<16x32xf32, #tpu.memory_space<vmem>>, vector<16x32xf32>
    %1 = arith.truncf %0 : vector<16x32xf32> to vector<16x32xbf16>
    %c0_1 = arith.constant 0 : index
    %c0_2 = arith.constant 0 : index
    %2 = vector.load %arg2[%c0_1, %c0_2] : memref<16x32xf32, #tpu.memory_space<vmem>>, vector<16x32xf32>
    %3 = arith.truncf %2 : vector<16x32xf32> to vector<16x32xbf16>
    %c0_3 = arith.constant 0 : index
    %c0_4 = arith.constant 0 : index
    %4 = vector.load %arg3[%c0_3, %c0_4] : memref<32x128xbf16, #tpu.memory_space<vmem>>, vector<32x128xbf16>
    %cst = arith.constant dense<0.000000e+00> : vector<16x128xf32>
    %5 = tpu.matmul %1, %4, %cst {dimension_numbers = #tpu.dot_dimension_numbers<[1], [0], [0], [1], [0, 0, 1, 1], [], []>} : vector<16x32xbf16>, vector<32x128xbf16>, vector<16x128xf32> -> vector<16x128xf32>
    %c0_5 = arith.constant 0 : index
    %c0_6 = arith.constant 0 : index
    %6 = vector.load %arg4[%c0_5, %c0_6] : memref<32x128xbf16, #tpu.memory_space<vmem>>, vector<32x128xbf16>
    %cst_7 = arith.constant dense<0.000000e+00> : vector<16x128xf32>
    %7 = tpu.matmul %3, %6, %cst_7 {dimension_numbers = #tpu.dot_dimension_numbers<[1], [0], [0], [1], [0, 0, 1, 1], [], []>} : vector<16x32xbf16>, vector<32x128xbf16>, vector<16x128xf32> -> vector<16x128xf32>
    %8 = arith.addf %5, %7 : vector<16x128xf32>
    %c0_8 = arith.constant 0 : index
    %c0_9 = arith.constant 0 : index
    %9 = vector.load %arg9[%c0_8, %c0_9] : memref<8x128xf32, #tpu.memory_space<vmem>>, vector<1x128xf32>
    %10 = vector.broadcast %9 : vector<1x128xf32> to vector<16x128xf32>
    %11 = arith.addf %8, %10 : vector<16x128xf32>
    %cst_10 = arith.constant 0.000000e+00 : f32
    %12 = vector.broadcast %cst_10 : f32 to vector<16x128xf32>
    %13 = arith.maximumf %11, %12 : vector<16x128xf32>
    %14 = arith.truncf %13 : vector<16x128xf32> to vector<16x128xbf16>
    %c0_11 = arith.constant 0 : index
    %c0_12 = arith.constant 0 : index
    %15 = vector.load %arg5[%c0_11, %c0_12] : memref<128x128xbf16, #tpu.memory_space<vmem>>, vector<128x128xbf16>
    %cst_13 = arith.constant dense<0.000000e+00> : vector<16x128xf32>
    %16 = tpu.matmul %14, %15, %cst_13 {dimension_numbers = #tpu.dot_dimension_numbers<[1], [0], [0], [1], [0, 0, 1, 1], [], []>} : vector<16x128xbf16>, vector<128x128xbf16>, vector<16x128xf32> -> vector<16x128xf32>
    %c1 = arith.constant 1 : index
    %c0_14 = arith.constant 0 : index
    %17 = vector.load %arg9[%c1, %c0_14] : memref<8x128xf32, #tpu.memory_space<vmem>>, vector<1x128xf32>
    %18 = vector.broadcast %17 : vector<1x128xf32> to vector<16x128xf32>
    %19 = arith.addf %16, %18 : vector<16x128xf32>
    %cst_15 = arith.constant 0.000000e+00 : f32
    %20 = vector.broadcast %cst_15 : f32 to vector<16x128xf32>
    %21 = arith.maximumf %19, %20 : vector<16x128xf32>
    %22 = arith.truncf %21 : vector<16x128xf32> to vector<16x128xbf16>
    %c0_16 = arith.constant 0 : index
    %c0_17 = arith.constant 0 : index
    %23 = vector.load %arg6[%c0_16, %c0_17] : memref<128x128xbf16, #tpu.memory_space<vmem>>, vector<128x128xbf16>
    %cst_18 = arith.constant dense<0.000000e+00> : vector<16x128xf32>
    %24 = tpu.matmul %22, %23, %cst_18 {dimension_numbers = #tpu.dot_dimension_numbers<[1], [0], [0], [1], [0, 0, 1, 1], [], []>} : vector<16x128xbf16>, vector<128x128xbf16>, vector<16x128xf32> -> vector<16x128xf32>
    %c2 = arith.constant 2 : index
    %c0_19 = arith.constant 0 : index
    %25 = vector.load %arg9[%c2, %c0_19] : memref<8x128xf32, #tpu.memory_space<vmem>>, vector<1x128xf32>
    %26 = vector.broadcast %25 : vector<1x128xf32> to vector<16x128xf32>
    %27 = arith.addf %24, %26 : vector<16x128xf32>
    %cst_20 = arith.constant 0.000000e+00 : f32
    %28 = vector.broadcast %cst_20 : f32 to vector<16x128xf32>
    %29 = arith.maximumf %27, %28 : vector<16x128xf32>
    %30 = arith.truncf %29 : vector<16x128xf32> to vector<16x128xbf16>
    %c0_21 = arith.constant 0 : index
    %c0_22 = arith.constant 0 : index
    %31 = vector.load %arg7[%c0_21, %c0_22] : memref<128x128xbf16, #tpu.memory_space<vmem>>, vector<128x128xbf16>
    %cst_23 = arith.constant dense<0.000000e+00> : vector<16x128xf32>
    %32 = tpu.matmul %30, %31, %cst_23 {dimension_numbers = #tpu.dot_dimension_numbers<[1], [0], [0], [1], [0, 0, 1, 1], [], []>} : vector<16x128xbf16>, vector<128x128xbf16>, vector<16x128xf32> -> vector<16x128xf32>
    %c3 = arith.constant 3 : index
    %c0_24 = arith.constant 0 : index
    %33 = vector.load %arg9[%c3, %c0_24] : memref<8x128xf32, #tpu.memory_space<vmem>>, vector<1x128xf32>
    %34 = vector.broadcast %33 : vector<1x128xf32> to vector<16x128xf32>
    %35 = arith.addf %32, %34 : vector<16x128xf32>
    %cst_25 = arith.constant 0.000000e+00 : f32
    %36 = vector.broadcast %cst_25 : f32 to vector<16x128xf32>
    %37 = arith.maximumf %35, %36 : vector<16x128xf32>
    %38 = arith.truncf %37 : vector<16x128xf32> to vector<16x128xbf16>
    %c0_26 = arith.constant 0 : index
    %c0_27 = arith.constant 0 : index
    %39 = vector.load %arg8[%c0_26, %c0_27] : memref<128x128xbf16, #tpu.memory_space<vmem>>, vector<128x128xbf16>
    %cst_28 = arith.constant dense<0.000000e+00> : vector<16x128xf32>
    %40 = tpu.matmul %38, %39, %cst_28 {dimension_numbers = #tpu.dot_dimension_numbers<[1], [0], [0], [1], [0, 0, 1, 1], [], []>} : vector<16x128xbf16>, vector<128x128xbf16>, vector<16x128xf32> -> vector<16x128xf32>
    %c4 = arith.constant 4 : index
    %c0_29 = arith.constant 0 : index
    %41 = vector.load %arg9[%c4, %c0_29] : memref<8x128xf32, #tpu.memory_space<vmem>>, vector<1x128xf32>
    %42 = vector.broadcast %41 : vector<1x128xf32> to vector<16x128xf32>
    %43 = arith.addf %40, %42 : vector<16x128xf32>
    %c0_30 = arith.constant 0 : index
    %c0_31 = arith.constant 0 : index
    %44 = vector.load %arg10[%c0_30, %c0_31] : memref<16x128xf32, #tpu.memory_space<vmem>>, vector<16x128xf32>
    tpu.vector_store %arg10[%c0_30, %c0_31], %43 {strides = array<i32>} : memref<16x128xf32, #tpu.memory_space<vmem>>, vector<16x128xf32>,
    return
  }
  func.func @transform_0(%arg0: i32) -> (i32, i32) {
    %c0_i32 = arith.constant 0 : i32
    %c0_i32_0 = arith.constant 0 : i32
    return %arg0, %c0_i32 : i32, i32
  }
  func.func @transform_1(%arg0: i32) -> (i32, i32) {
    %c0_i32 = arith.constant 0 : i32
    %c0_i32_0 = arith.constant 0 : i32
    return %arg0, %c0_i32 : i32, i32
  }
  func.func @transform_2(%arg0: i32) -> (i32, i32) {
    %c0_i32 = arith.constant 0 : i32
    %c0_i32_0 = arith.constant 0 : i32
    %c0_i32_1 = arith.constant 0 : i32
    return %c0_i32, %c0_i32_0 : i32, i32
  }
  func.func @transform_3(%arg0: i32) -> (i32, i32) {
    %c0_i32 = arith.constant 0 : i32
    %c0_i32_0 = arith.constant 0 : i32
    %c0_i32_1 = arith.constant 0 : i32
    return %c0_i32, %c0_i32_0 : i32, i32
  }
  func.func @transform_4(%arg0: i32) -> (i32, i32) {
    %c0_i32 = arith.constant 0 : i32
    %c0_i32_0 = arith.constant 0 : i32
    %c0_i32_1 = arith.constant 0 : i32
    return %c0_i32, %c0_i32_0 : i32, i32
  }
  func.func @transform_5(%arg0: i32) -> (i32, i32) {
    %c0_i32 = arith.constant 0 : i32
    %c0_i32_0 = arith.constant 0 : i32
    %c0_i32_1 = arith.constant 0 : i32
    return %c0_i32, %c0_i32_0 : i32, i32
  }
  func.func @transform_6(%arg0: i32) -> (i32, i32) {
    %c0_i32 = arith.constant 0 : i32
    %c0_i32_0 = arith.constant 0 : i32
    %c0_i32_1 = arith.constant 0 : i32
    return %c0_i32, %c0_i32_0 : i32, i32
  }
  func.func @transform_7(%arg0: i32) -> (i32, i32) {
    %c0_i32 = arith.constant 0 : i32
    %c0_i32_0 = arith.constant 0 : i32
    %c0_i32_1 = arith.constant 0 : i32
    return %c0_i32, %c0_i32_0 : i32, i32
  }
  func.func @transform_8(%arg0: i32) -> (i32, i32) {
    %c0_i32 = arith.constant 0 : i32
    %c0_i32_0 = arith.constant 0 : i32
    %c0_i32_1 = arith.constant 0 : i32
    return %c0_i32, %c0_i32_0 : i32, i32
  }
  func.func @transform_9(%arg0: i32) -> (i32, i32) {
    %c0_i32 = arith.constant 0 : i32
    %c0_i32_0 = arith.constant 0 : i32
    return %arg0, %c0_i32 : i32, i32
  }
}

</mosaic_0001>

<bundles_post_ra>
// kernel: tpu_custom_call.1
= control target key start
LH: loop header
LB: loop body
LE: loop exit
PB: predicated region body
PF: predicated region fallthrough
CT: control target
= control target key end

     0   :  { %14 = vsyncpa [#allocation3], 0  ;;  %s1358_s0 = inlined_call_operand.hbm [shape: f32[16,32], index: 0, kind: input, shape index: {}]   ;;  %s1359_s1 = inlined_call_operand.hbm [shape: f32[16,32], index: 1, kind: input, shape index: {}]   ;;  %s1360_s2 = inlined_call_operand.hbm [shape: bf16[32,128], index: 2, kind: input, shape index: {}]   ;;  %s1361_s3 = inlined_call_operand.hbm [shape: bf16[32,128], index: 3, kind: input, shape index: {}]   ;;  %s1362_s4 = inlined_call_operand.hbm [shape: bf16[128,128], index: 4, kind: input, shape index: {}]   ;;  %s1363_s5 = inlined_call_operand.hbm [shape: bf16[128,128], index: 5, kind: input, shape index: {}]   ;;  %s1364_s6 = inlined_call_operand.hbm [shape: bf16[128,128], index: 6, kind: input, shape index: {}]   ;;  %s1365_s7 = inlined_call_operand.hbm [shape: bf16[128,128], index: 7, kind: input, shape index: {}]   ;;  %s1366_s8 = inlined_call_operand.vmem [shape: f32[8,128], index: 8, kind: input, shape index: {}]   ;;  %s1367_s9 = inlined_call_operand.hbm [shape: f32[16,128], index: 9, kind: output, shape index: {}]  }
   0x1   :  { %15 = vsyncpa [#allocation6], 0 }
   0x2   :  { %16 = vsyncpa [#allocation9], 0 }
   0x3   :  { %17 = vsyncpa [#allocation12], 0 }
   0x4   :  { %18 = vsyncpa [#allocation15], 0 }
   0x5   :  { %19 = vsyncpa [#allocation4], 0  ;;  %s1176_s30 = smov [#allocation5]  }
   0x6   :  { %s37_s10 = sshll.u32 %s1176_s30, 4  ;;  %s38_s10 = int_to_ptr.vmem [resolvable:$true] %s37_s10 }
   0x7   :  { %s992_s11 = scalar_lea.vmem %s38_s10, 256  ;;  %p997_p1 = scmp.lt.s32.totalorder %s38_s10, %s38_s10 }
   0x8   :  { %p993_p0 = scmp.ne.s32.totalorder %s38_s10, %s992_s11  ;;  %p998_p2 = scmp.lt.s32.totalorder %s992_s11, %s992_s11 }
   0xa   :  { %p999_p3 = por %p998_p2, %p997_p1 }
   0xc   :  { %p1000_p4 = pnand %p999_p3, %p993_p0 }
   0xe   :  { %1003 = shalt.err (!%p1000_p4)
}
   0xf   :  { %s1177_s12 = smov 128   ;;  %s1178_s13 = smov 8  }
  0x10   :  { %43 = dma.hbm_to_vmem [thread:$0]  %s1359_s1, 256, %s38_s10, [#allocation6], %s1177_s12, %s1177_s12, %s1178_s13  }
  0x11   :  { %s1179_s16 = smov [#allocation8]   ;;  %s1180_s18 = smov [#allocation11]  }
  0x12   :  { %s61_s17 = sshll.u32 %s1179_s16, 4  ;;  %s85_s19 = sshll.u32 %s1180_s18, 4  ;;  %s62_s17 = int_to_ptr.vmem [resolvable:$true] %s61_s17  ;;  %s86_s19 = int_to_ptr.vmem [resolvable:$true] %s85_s19 }
  0x13   :  { %s1012_s20 = scalar_lea.vmem %s62_s17, 256  ;;  %p1017_p6 = scmp.lt.s32.totalorder %s62_s17, %s62_s17 }
  0x14   :  { %p1013_p5 = scmp.ne.s32.totalorder %s62_s17, %s1012_s20  ;;  %p1018_p7 = scmp.lt.s32.totalorder %s1012_s20, %s1012_s20 }
  0x16   :  { %p1019_p8 = por %p1018_p7, %p1017_p6 }
  0x18   :  { %p1020_p9 = pnand %p1019_p8, %p1013_p5 }
  0x1a   :  { %1023 = shalt.err (!%p1020_p9)
}
  0x1b   :  { %s1181_s21 = smov 64   ;;  %s1182_s22 = smov 4  }
  0x1c   :  { %67 = dma.hbm_to_vmem [thread:$0]  %s1361_s3, 256, %s62_s17, [#allocation9], %s1181_s21, %s1181_s21, %s1182_s22  }
  0x1d   :  { %s1032_s1 = scalar_lea.vmem %s86_s19, 1024  ;;  %p1037_p11 = scmp.lt.s32.totalorder %s86_s19, %s86_s19 }
  0x1e   :  { %p1033_p10 = scmp.ne.s32.totalorder %s86_s19, %s1032_s1  ;;  %p1038_p12 = scmp.lt.s32.totalorder %s1032_s1, %s1032_s1 }
  0x20   :  { %p1039_p13 = por %p1038_p12, %p1037_p11 }
  0x22   :  { %p1040_p0 = pnand %p1039_p13, %p1033_p10 }
  0x24   :  { %1043 = shalt.err (!%p1040_p0)
}
  0x25   :  { %91 = dma.hbm_to_vmem [thread:$0]  %s1363_s5, 1024, %s86_s19, [#allocation12], %s1181_s21, %s1181_s21, %s1182_s22  }
  0x26   :  { %s1183_s27 = smov [#allocation2]   ;;  %s1184_s29 = smov [#allocation7]  }
  0x27   :  { %s25_s28 = sshll.u32 %s1183_s27, 4  ;;  %s49_s3 = sshll.u32 %s1184_s29, 4  ;;  %s26_s28 = int_to_ptr.vmem [resolvable:$true] %s25_s28  ;;  %s50_s3 = int_to_ptr.vmem [resolvable:$true] %s49_s3 }
  0x28   :  { %s1052_s30 = scalar_lea.vmem %s26_s28, 256  ;;  %p1057_p2 = scmp.lt.s32.totalorder %s26_s28, %s26_s28 }
  0x29   :  { %p1053_p1 = scmp.ne.s32.totalorder %s26_s28, %s1052_s30  ;;  %p1058_p3 = scmp.lt.s32.totalorder %s1052_s30, %s1052_s30 }
  0x2b   :  { %p1059_p4 = por %p1058_p3, %p1057_p2 }
  0x2d   :  { %p1060_p5 = pnand %p1059_p4, %p1053_p1 }
  0x2f   :  { %1063 = shalt.err (!%p1060_p5)
}
  0x30   :  { %31 = dma.hbm_to_vmem [thread:$0]  %s1358_s0, 256, %s26_s28, [#allocation3], %s1177_s12, %s1177_s12, %s1178_s13  }
  0x31   :  { %s1072_s5 = scalar_lea.vmem %s50_s3, 256  ;;  %p1077_p7 = scmp.lt.s32.totalorder %s50_s3, %s50_s3 }
  0x32   :  { %p1073_p6 = scmp.ne.s32.totalorder %s50_s3, %s1072_s5  ;;  %p1078_p8 = scmp.lt.s32.totalorder %s1072_s5, %s1072_s5 }
  0x34   :  { %p1079_p9 = por %p1078_p8, %p1077_p7 }
  0x36   :  { %p1080_p10 = pnand %p1079_p9, %p1073_p6 }
  0x38   :  { %1083 = shalt.err (!%p1080_p10)
}
  0x39   :  { %55 = dma.hbm_to_vmem [thread:$0]  %s1360_s2, 256, %s50_s3, [#allocation6], %s1181_s21, %s1181_s21, %s1182_s22  }
  0x3a   :  { %s1185_s16 = smov [#allocation10]   ;;  %s1186_s18 = smov [#allocation13]  }
  0x3b   :  { %s73_s17 = sshll.u32 %s1185_s16, 4  ;;  %s97_s0 = sshll.u32 %s1186_s18, 4  ;;  %s74_s17 = int_to_ptr.vmem [resolvable:$true] %s73_s17  ;;  %s98_s0 = int_to_ptr.vmem [resolvable:$true] %s97_s0 }
  0x3c   :  { %s1092_s19 = scalar_lea.vmem %s74_s17, 1024  ;;  %p1097_p12 = scmp.lt.s32.totalorder %s74_s17, %s74_s17 }
  0x3d   :  { %p1093_p11 = scmp.ne.s32.totalorder %s74_s17, %s1092_s19  ;;  %p1098_p13 = scmp.lt.s32.totalorder %s1092_s19, %s1092_s19 }
  0x3f   :  { %p1099_p0 = por %p1098_p13, %p1097_p12 }
  0x41   :  { %p1100_p1 = pnand %p1099_p0, %p1093_p11 }
  0x43   :  { %1103 = shalt.err (!%p1100_p1)
}
  0x44   :  { %79 = dma.hbm_to_vmem [thread:$0]  %s1362_s4, 1024, %s74_s17, [#allocation9], %s1181_s21, %s1181_s21, %s1182_s22  }
  0x45   :  { %s1112_s2 = scalar_lea.vmem %s98_s0, 1024  ;;  %p1117_p3 = scmp.lt.s32.totalorder %s98_s0, %s98_s0 }
  0x46   :  { %p1113_p2 = scmp.ne.s32.totalorder %s98_s0, %s1112_s2  ;;  %p1118_p4 = scmp.lt.s32.totalorder %s1112_s2, %s1112_s2 }
  0x48   :  { %p1119_p5 = por %p1118_p4, %p1117_p3 }
  0x4a   :  { %p1120_p6 = pnand %p1119_p5, %p1113_p2 }
  0x4c   :  { %1123 = shalt.err (!%p1120_p6)
}
  0x4d   :  { %103 = dma.hbm_to_vmem [thread:$0]  %s1364_s6, 1024, %s98_s0, [#allocation12], %s1181_s21, %s1181_s21, %s1182_s22  }
  0x4e   :  { %s1187_s25 = smov [#allocation14]  }
  0x4f   :  { %s109_s26 = sshll.u32 %s1187_s25, 4  ;;  %s110_s26 = int_to_ptr.vmem [resolvable:$true] %s109_s26 }
  0x50   :  { %s1132_s27 = scalar_lea.vmem %s110_s26, 1024  ;;  %p1137_p8 = scmp.lt.s32.totalorder %s110_s26, %s110_s26 }
  0x51   :  { %p1133_p7 = scmp.ne.s32.totalorder %s110_s26, %s1132_s27  ;;  %p1138_p9 = scmp.lt.s32.totalorder %s1132_s27, %s1132_s27 }
  0x53   :  { %p1139_p10 = por %p1138_p9, %p1137_p8 }
  0x55   :  { %p1140_p11 = pnand %p1139_p10, %p1133_p7 }
  0x57   :  { %1143 = shalt.err (!%p1140_p11)
}
  0x58   :  { %115 = dma.hbm_to_vmem [thread:$0]  %s1365_s7, 1024, %s110_s26, [#allocation15], %s1181_s21, %s1181_s21, %s1182_s22  }
  0x59   :  { %1164 = dma.done.wait [#allocation3], 256  }
  0x5a   :  { %1165 = vsyncadd [#allocation3], 4294967040 }
  0x5b   :  { %1166 = dma.done.wait [#allocation6], 512  }
  0x5c   :  { %1167 = vsyncadd [#allocation6], 4294966784 }
  0x5d   :  { %1168 = dma.done.wait [#allocation9], 1280  }
  0x5e   :  { %1169 = vsyncadd [#allocation9], 4294966016 }
  0x5f   :  { %1170 = dma.done.wait [#allocation12], 2048  }
  0x60   :  { %1171 = vsyncadd [#allocation12], 4294965248 }
  0x61   :  { %1172 = dma.done.wait [#allocation15], 1024  }
  0x62   :  { %1173 = vsyncadd [#allocation15], 4294966272  ;;  %v1188_v0 = vmov 0.0   ;;  %vm1189_vm0 = vmmov 0   ;;  %v948_v1 = vld [vmem:[#allocation8 + $0x8] sm:$0xff]   ;;  %v949_v2 = vld [vmem:[#allocation7 + $0x8] sm:$0xff]  }
  0x63   :  { %837 = vmatprep.subr.bf16.mxu0 %v1188_v0  ;;  %845 = vmatprep.subr.bf16.mxu1 %v1188_v0  ;;  %v950_v3 = vld [vmem:[#allocation8] sm:$0xff]   ;;  %v951_v4 = vld [vmem:[#allocation7] sm:$0xff]   ;;  %v147_v6 = vld [vmem:[#allocation5 + $0x8] sm:$0xff]  ;;  %vm169_vm1 = vcmask 261120   ;;  %s1190_s14 = smov [#allocation16]  }
  0x64   :  { %841 = vmatprep.mubr.msk.bf16.mxu0 %vm1189_vm0, %v1188_v0  ;;  %849 = vmatprep.mubr.msk.bf16.mxu1 %vm1189_vm0, %v1188_v0  ;;  %v146_v5 = vld [vmem:[#allocation5] sm:$0xff]  ;;  %v143_v7 = vld [vmem:[#allocation2] sm:$0xff]  ;;  %v144_v9 = vld [vmem:[#allocation2 + $0x8] sm:$0xff]  ;;  %s736_s15 = sshll.u32 %s1190_s14, 4  ;;  %s737_s15 = int_to_ptr.vmem [resolvable:$true] %s736_s15 }
  0x65   :  { %838 = vmatpush3.bf16.msra.mxu0 %v948_v1  ;;  %846 = vmatpush3.bf16.msra.mxu1 %v949_v2  ;;  %v148_v8 = vpack.c.bf16 %v147_v6, %v146_v5  ;;  %v145_v10 = vpack.c.bf16 %v144_v9, %v143_v7  ;;  %v952_v11 = vld [vmem:[#allocation10 + $0x38] sm:$0xff]   ;;  %v953_v12 = vld [vmem:[#allocation10 + $0x30] sm:$0xff]   ;;  %v954_v13 = vld [vmem:[#allocation10 + $0x28] sm:$0xff]   ;;  %s1144_s16 = scalar_lea.vmem %s737_s15, 256  ;;  %p1149_p13 = scmp.lt.s32.totalorder %s737_s15, %s737_s15 }
  0x66   :  { %839 = vmatprep.subr.bf16.mxu0 %v1188_v0  ;;  %847 = vmatprep.subr.bf16.mxu1 %v1188_v0  ;;  %v955_v14 = vld [vmem:[#allocation10 + $0x20] sm:$0xff]   ;;  %v956_v15 = vld [vmem:[#allocation10 + $0x18] sm:$0xff]   ;;  %v957_v16 = vld [vmem:[#allocation10 + $0x10] sm:$0xff]   ;;  %p1145_p12 = scmp.ne.s32.totalorder %s737_s15, %s1144_s16  ;;  %p1150_p0 = scmp.lt.s32.totalorder %s1144_s16, %s1144_s16 }
  0x67   :  { %v958_v17 = vld [vmem:[#allocation10 + $0x8] sm:$0xff]   ;;  %v959_v18 = vld [vmem:[#allocation10] sm:$0xff]   ;;  %v960_v19 = vld [vmem:[#allocation11 + $0x38] sm:$0xff]  }
  0x68   :  { %v961_v20 = vld [vmem:[#allocation11 + $0x30] sm:$0xff]   ;;  %v962_v21 = vld [vmem:[#allocation11 + $0x28] sm:$0xff]   ;;  %v963_v22 = vld [vmem:[#allocation11 + $0x20] sm:$0xff]   ;;  %p1151_p1 = por %p1150_p0, %p1149_p13 }
  0x69   :  { %840 = vmatpush3.bf16.msra.mxu0 %v950_v3  ;;  %848 = vmatpush3.bf16.msra.mxu1 %v951_v4  ;;  %v964_v23 = vld [vmem:[#allocation11 + $0x18] sm:$0xff]   ;;  %v758_v28 = vld [vmem:[%s1366_s8] ss:$0 sm:$0xff]  ;;  %v965_v40 = vld [vmem:[#allocation11 + $0x10] sm:$0xff]  }
  0x6a   :  { %853 = vmatprep.subr.bf16.mxu0 %v1188_v0  ;;  %873 = vmatprep.subr.bf16.mxu1 %v1188_v0  ;;  %v966_v41 = vld [vmem:[#allocation11 + $0x8] sm:$0xff]   ;;  %v967_v42 = vld [vmem:[#allocation11] sm:$0xff]   ;;  %v968_v43 = vld [vmem:[#allocation13 + $0x38] sm:$0xff]   ;;  %p1152_p2 = pnand %p1151_p1, %p1145_p12 }
  0x6b   :  { %v969_v44 = vld [vmem:[#allocation13 + $0x30] sm:$0xff]   ;;  %v970_v45 = vld [vmem:[#allocation13 + $0x28] sm:$0xff]   ;;  %v971_v46 = vld [vmem:[#allocation13 + $0x20] sm:$0xff]  }
  0x6c   :  { %842 = vmatmul.mubr.msk.bf16.vlgmr.msra.gmra.mxu0 %vm169_vm1, %v148_v8  ;;  %850 = vmatmul.mubr.msk.bf16.vlgmr.msra.gmra.mxu1 %vm169_vm1, %v145_v10  ;;  %v972_v47 = vld [vmem:[#allocation13 + $0x18] sm:$0xff]   ;;  %v759_v48 = vld [vmem:[%s1366_s8 + $0x1] ss:$0 sm:$0xff]  ;;  %v973_v58 = vld [vmem:[#allocation13 + $0x10] sm:$0xff]  }
  0x6d   :  { %854 = vmatpush3.bf16.msra.mxu0 %v952_v11  ;;  %869 = vmatprep.mubr.msk.bf16.mxu0 %vm1189_vm0, %v1188_v0  ;;  %v974_v59 = vld [vmem:[#allocation13 + $0x8] sm:$0xff]   ;;  %v975_v60 = vld [vmem:[#allocation13] sm:$0xff]   ;;  %v976_v61 = vld [vmem:[#allocation14 + $0x38] sm:$0xff]  }
  0x6e   :  { %855 = vmatprep.subr.bf16.mxu0 %v1188_v0  ;;  %889 = vmatprep.mubr.msk.bf16.mxu1 %vm1189_vm0, %v1188_v0  ;;  %v977_v62 = vld [vmem:[#allocation14 + $0x30] sm:$0xff]   ;;  %v978_v63 = vld [vmem:[#allocation14 + $0x28] sm:$0xff]   ;;  %v979_v1 = vld [vmem:[#allocation14 + $0x20] sm:$0xff]  }
  0x6f   :  { %874 = vmatpush3.bf16.msra.mxu1 %v960_v19  ;;  %v980_v2 = vld [vmem:[#allocation14 + $0x18] sm:$0xff]   ;;  %v768_v3 = vld [vmem:[%s1366_s8 + $0x2] ss:$0 sm:$0xff] }
  0x70   :  { %875 = vmatprep.subr.bf16.mxu1 %v1188_v0 }
  0x71   :  { %856 = vmatpush3.bf16.msra.mxu0 %v953_v12 }
  0x72   :  { %857 = vmatprep.subr.bf16.mxu0 %v1188_v0 }
  0x73   :  { %876 = vmatpush3.bf16.msra.mxu1 %v961_v20 }
  0x74   :  { %877 = vmatprep.subr.bf16.mxu1 %v1188_v0 }
  0x75   :  { %858 = vmatpush3.bf16.msra.mxu0 %v954_v13  ;;  %v981_v13 = vld [vmem:[#allocation14 + $0x10] sm:$0xff]  }
  0x76   :  { %859 = vmatprep.subr.bf16.mxu0 %v1188_v0 }
  0x77   :  { %878 = vmatpush3.bf16.msra.mxu1 %v962_v21 }
  0x78   :  { %879 = vmatprep.subr.bf16.mxu1 %v1188_v0 }
  0x79   :  { %860 = vmatpush3.bf16.msra.mxu0 %v955_v14  ;;  %v982_v14 = vld [vmem:[#allocation14 + $0x8] sm:$0xff]  }
  0x7a   :  { %861 = vmatprep.subr.bf16.mxu0 %v1188_v0 }
  0x7b   :  { %880 = vmatpush3.bf16.msra.mxu1 %v963_v22 }
  0x7c   :  { %881 = vmatprep.subr.bf16.mxu1 %v1188_v0 }
  0x7d   :  { %862 = vmatpush3.bf16.msra.mxu0 %v956_v15  ;;  %v983_v15 = vld [vmem:[#allocation14] sm:$0xff]  }
  0x7e   :  { %863 = vmatprep.subr.bf16.mxu0 %v1188_v0 }
  0x7f   :  { %882 = vmatpush3.bf16.msra.mxu1 %v964_v23 }
  0x80   :  { %883 = vmatprep.subr.bf16.mxu1 %v1188_v0 }
  0x81   :  { %864 = vmatpush3.bf16.msra.mxu0 %v957_v16  ;;  %v777_v16 = vld [vmem:[%s1366_s8 + $0x3] ss:$0 sm:$0xff] }
  0x82   :  { %865 = vmatprep.subr.bf16.mxu0 %v1188_v0 }
  0x83   :  { %884 = vmatpush3.bf16.msra.mxu1 %v965_v40 }
  0x84   :  { %885 = vmatprep.subr.bf16.mxu1 %v1188_v0 }
  0x85   :  { %866 = vmatpush3.bf16.msra.mxu0 %v958_v17 }
  0x86   :  { %867 = vmatprep.subr.bf16.mxu0 %v1188_v0 }
  0x87   :  { %886 = vmatpush3.bf16.msra.mxu1 %v966_v41 }
  0x88   :  { %887 = vmatprep.subr.bf16.mxu1 %v1188_v0 }
  0x89   :  { %868 = vmatpush3.bf16.msra.mxu0 %v959_v18 }
  0x8a   :  { %893 = vmatprep.subr.bf16.mxu0 %v1188_v0 }
  0x8b   :  { %888 = vmatpush3.bf16.msra.mxu1 %v967_v42 }
  0x8c   :  { %913 = vmatprep.subr.bf16.mxu1 %v1188_v0 }
 0x12c   :  { %v207_v24 = vpop.f32.mrf.mxu0  ;;  %v263_v25 = vpop.f32.mrf.mxu1 }
 0x12d   :  { %v264_v26 = vadd.f32 %v263_v25, %v207_v24 }
 0x12e   :  { %v843_v27 = vpop.f32.mrf.mxu0  ;;  %v851_v29 = vpop.f32.mrf.mxu1 }
 0x12f   :  { %v275_v32 = vadd.f32 %v758_v28, %v264_v26 }
 0x130   :  { %v210_v30 = vpop.f32.mrf.mxu0  ;;  %v266_v31 = vpop.f32.mrf.mxu1 }
 0x131   :  { %v267_v33 = vadd.f32 %v266_v31, %v210_v30  ;;  %v277_v37 = vmax.f32 %v275_v32, 0.0 }
 0x132   :  { %v844_v34 = vpop.f32.mrf.mxu0  ;;  %v852_v35 = vpop.f32.mrf.mxu1 }
 0x133   :  { %v276_v36 = vadd.f32 %v758_v28, %v267_v33 }
 0x135   :  { %v278_v38 = vmax.f32 %v276_v36, 0.0 }
 0x137   :  { %v279_v39 = vpack.c.bf16 %v278_v38, %v277_v37 }
 0x139   :  { %870 = vmatmul.mubr.bf16.vlgmr.msra.gmra.mxu0 %v279_v39 }
 0x13a   :  { %909 = vmatprep.mubr.msk.bf16.mxu0 %vm1189_vm0, %v1188_v0  ;;  %894 = vmatpush3.bf16.msra.mxu0 %v968_v43 }
 0x13b   :  { %895 = vmatprep.subr.bf16.mxu0 %v1188_v0 }
 0x13e   :  { %896 = vmatpush3.bf16.msra.mxu0 %v969_v44 }
 0x13f   :  { %897 = vmatprep.subr.bf16.mxu0 %v1188_v0 }
 0x142   :  { %898 = vmatpush3.bf16.msra.mxu0 %v970_v45 }
 0x143   :  { %899 = vmatprep.subr.bf16.mxu0 %v1188_v0 }
 0x146   :  { %900 = vmatpush3.bf16.msra.mxu0 %v971_v46 }
 0x147   :  { %901 = vmatprep.subr.bf16.mxu0 %v1188_v0 }
 0x14a   :  { %902 = vmatpush3.bf16.msra.mxu0 %v972_v47 }
 0x14b   :  { %903 = vmatprep.subr.bf16.mxu0 %v1188_v0 }
 0x14e   :  { %904 = vmatpush3.bf16.msra.mxu0 %v973_v58 }
 0x14f   :  { %905 = vmatprep.subr.bf16.mxu0 %v1188_v0 }
 0x152   :  { %906 = vmatpush3.bf16.msra.mxu0 %v974_v59 }
 0x153   :  { %907 = vmatprep.subr.bf16.mxu0 %v1188_v0 }
 0x156   :  { %908 = vmatpush3.bf16.msra.mxu0 %v975_v60 }
 0x1f9   :  { %v383_v49 = vpop.f32.mrf.mxu0 }
 0x1fa   :  { %v384_v51 = vadd.f32 %v759_v48, %v383_v49 }
 0x1fb   :  { %v871_v50 = vpop.f32.mrf.mxu0 }
 0x1fc   :  { %v390_v55 = vmax.f32 %v384_v51, 0.0 }
 0x1fd   :  { %v386_v52 = vpop.f32.mrf.mxu0 }
 0x1fe   :  { %v387_v53 = vadd.f32 %v759_v48, %v386_v52 }
 0x1ff   :  { %v872_v54 = vpop.f32.mrf.mxu0 }
 0x200   :  { %v391_v56 = vmax.f32 %v387_v53, 0.0 }
 0x202   :  { %v392_v57 = vpack.c.bf16 %v391_v56, %v390_v55 }
 0x204   :  { %890 = vmatmul.mubr.bf16.vlgmr.msra.gmra.mxu1 %v392_v57 }
 0x205   :  { %929 = vmatprep.mubr.msk.bf16.mxu1 %vm1189_vm0, %v1188_v0  ;;  %914 = vmatpush3.bf16.msra.mxu1 %v976_v61 }
 0x206   :  { %915 = vmatprep.subr.bf16.mxu1 %v1188_v0 }
 0x209   :  { %916 = vmatpush3.bf16.msra.mxu1 %v977_v62 }
 0x20a   :  { %917 = vmatprep.subr.bf16.mxu1 %v1188_v0 }
 0x20d   :  { %918 = vmatpush3.bf16.msra.mxu1 %v978_v63 }
 0x20e   :  { %919 = vmatprep.subr.bf16.mxu1 %v1188_v0 }
 0x211   :  { %920 = vmatpush3.bf16.msra.mxu1 %v979_v1 }
 0x212   :  { %921 = vmatprep.subr.bf16.mxu1 %v1188_v0 }
 0x215   :  { %922 = vmatpush3.bf16.msra.mxu1 %v980_v2 }
 0x216   :  { %923 = vmatprep.subr.bf16.mxu1 %v1188_v0 }
 0x219   :  { %924 = vmatpush3.bf16.msra.mxu1 %v981_v13 }
 0x21a   :  { %925 = vmatprep.subr.bf16.mxu1 %v1188_v0 }
 0x21d   :  { %926 = vmatpush3.bf16.msra.mxu1 %v982_v14 }
 0x21e   :  { %927 = vmatprep.subr.bf16.mxu1 %v1188_v0  ;;  %v786_v0 = vld [vmem:[%s1366_s8 + $0x4] ss:$0 sm:$0xff] }
 0x221   :  { %928 = vmatpush3.bf16.msra.mxu1 %v983_v15 }
 0x2c4   :  { %v496_v4 = vpop.f32.mrf.mxu1 }
 0x2c5   :  { %v497_v6 = vadd.f32 %v768_v3, %v496_v4 }
 0x2c6   :  { %v891_v5 = vpop.f32.mrf.mxu1 }
 0x2c7   :  { %v503_v10 = vmax.f32 %v497_v6, 0.0 }
 0x2c8   :  { %v499_v7 = vpop.f32.mrf.mxu1 }
 0x2c9   :  { %v500_v8 = vadd.f32 %v768_v3, %v499_v7 }
 0x2ca   :  { %v892_v9 = vpop.f32.mrf.mxu1 }
 0x2cb   :  { %v504_v11 = vmax.f32 %v500_v8, 0.0 }
 0x2cd   :  { %v505_v12 = vpack.c.bf16 %v504_v11, %v503_v10 }
 0x2cf   :  { %910 = vmatmul.mubr.bf16.vlgmr.msra.gmra.mxu0 %v505_v12 }
 0x38f   :  { %v609_v17 = vpop.f32.mrf.mxu0 }
 0x390   :  { %v610_v19 = vadd.f32 %v777_v16, %v609_v17 }
 0x391   :  { %v911_v18 = vpop.f32.mrf.mxu0 }
 0x392   :  { %v616_v23 = vmax.f32 %v610_v19, 0.0 }
 0x393   :  { %v612_v20 = vpop.f32.mrf.mxu0 }
 0x394   :  { %v613_v21 = vadd.f32 %v777_v16, %v612_v20 }
 0x395   :  { %v912_v22 = vpop.f32.mrf.mxu0 }
 0x396   :  { %v617_v24 = vmax.f32 %v613_v21, 0.0 }
 0x398   :  { %v618_v25 = vpack.c.bf16 %v617_v24, %v616_v23 }
 0x39a   :  { %930 = vmatmul.mubr.bf16.vlgmr.msra.gmra.mxu1 %v618_v25 }
 0x45a   :  { %v722_v26 = vpop.f32.mrf.mxu1 }
 0x45b   :  { %v723_v27 = vadd.f32 %v786_v0, %v722_v26 }
 0x45c   :  { %v931_v28 = vpop.f32.mrf.mxu1 }
 0x45d   :  { %729 = vst [vmem:[#allocation16] sm:$0xff] %v723_v27 }
 0x45e   :  { %v725_v29 = vpop.f32.mrf.mxu1 }
 0x45f   :  { %v726_v30 = vadd.f32 %v786_v0, %v725_v29 }
 0x460   :  { %v932_v31 = vpop.f32.mrf.mxu1 }
 0x461   :  { %730 = vst [vmem:[#allocation16 + $0x8] sm:$0xff] %v726_v30 }
 0x462   :  { %1155 = shalt.err (!%p1152_p2)
}
 0x463   :  { %742 = dma.vmem_to_hbm [thread:$0]  %s737_s15, 256, %s1367_s9, [#allocation4], %s1177_s12, %s1177_s12, %s1178_s13  }
 0x464   :  { %1174 = dma.done.wait [#allocation4], 256  }
 0x465   :  { %1175 = vsyncadd [#allocation4], 4294967040 }
 0x466   :  { %746 = vsyncpa [#allocation3], 1 }
 0x467   :  { %747 = vsyncpa [#allocation6], 1 }
 0x468   :  { %748 = vsyncpa [#allocation9], 1 }
 0x469   :  { %749 = vsyncpa [#allocation12], 1 }
 0x46a   :  { %750 = vsyncpa [#allocation15], 1 }
 0x46b   :  { %751 = vsyncpa [#allocation4], 1 }

// kernel: tpu_custom_call.1
= control target key start
LH: loop header
LB: loop body
LE: loop exit
PB: predicated region body
PF: predicated region fallthrough
CT: control target
= control target key end

     0   :  { %14 = vsyncpa [#allocation3], 0  ;;  %s1358_s0 = inlined_call_operand.hbm [shape: f32[16,32], index: 0, kind: input, shape index: {}]   ;;  %s1359_s1 = inlined_call_operand.hbm [shape: f32[16,32], index: 1, kind: input, shape index: {}]   ;;  %s1360_s2 = inlined_call_operand.hbm [shape: bf16[32,128], index: 2, kind: input, shape index: {}]   ;;  %s1361_s3 = inlined_call_operand.hbm [shape: bf16[32,128], index: 3, kind: input, shape index: {}]   ;;  %s1362_s4 = inlined_call_operand.hbm [shape: bf16[128,128], index: 4, kind: input, shape index: {}]   ;;  %s1363_s5 = inlined_call_operand.hbm [shape: bf16[128,128], index: 5, kind: input, shape index: {}]   ;;  %s1364_s6 = inlined_call_operand.hbm [shape: bf16[128,128], index: 6, kind: input, shape index: {}]   ;;  %s1365_s7 = inlined_call_operand.hbm [shape: bf16[128,128], index: 7, kind: input, shape index: {}]   ;;  %s1366_s8 = inlined_call_operand.vmem [shape: f32[8,128], index: 8, kind: input, shape index: {}]   ;;  %s1367_s9 = inlined_call_operand.hbm [shape: f32[16,128], index: 9, kind: output, shape index: {}]  }
   0x1   :  { %15 = vsyncpa [#allocation6], 0 }
   0x2   :  { %16 = vsyncpa [#allocation9], 0 }
   0x3   :  { %17 = vsyncpa [#allocation12], 0 }
   0x4   :  { %18 = vsyncpa [#allocation15], 0 }
   0x5   :  { %19 = vsyncpa [#allocation4], 0  ;;  %s1176_s30 = smov [#allocation5]  }
   0x6   :  { %s37_s10 = sshll.u32 %s1176_s30, 4  ;;  %s38_s10 = int_to_ptr.vmem [resolvable:$true] %s37_s10 }
   0x7   :  { %s992_s11 = scalar_lea.vmem %s38_s10, 256  ;;  %p997_p1 = scmp.lt.s32.totalorder %s38_s10, %s38_s10 }
   0x8   :  { %p993_p0 = scmp.ne.s32.totalorder %s38_s10, %s992_s11  ;;  %p998_p2 = scmp.lt.s32.totalorder %s992_s11, %s992_s11 }
   0xa   :  { %p999_p3 = por %p998_p2, %p997_p1 }
   0xc   :  { %p1000_p4 = pnand %p999_p3, %p993_p0 }
   0xe   :  { %1003 = shalt.err (!%p1000_p4)
}
   0xf   :  { %s1177_s12 = smov 128   ;;  %s1178_s13 = smov 8  }
  0x10   :  { %43 = dma.hbm_to_vmem [thread:$0]  %s1359_s1, 256, %s38_s10, [#allocation6], %s1177_s12, %s1177_s12, %s1178_s13  }
  0x11   :  { %s1179_s16 = smov [#allocation8]   ;;  %s1180_s18 = smov [#allocation11]  }
  0x12   :  { %s61_s17 = sshll.u32 %s1179_s16, 4  ;;  %s85_s19 = sshll.u32 %s1180_s18, 4  ;;  %s62_s17 = int_to_ptr.vmem [resolvable:$true] %s61_s17  ;;  %s86_s19 = int_to_ptr.vmem [resolvable:$true] %s85_s19 }
  0x13   :  { %s1012_s20 = scalar_lea.vmem %s62_s17, 256  ;;  %p1017_p6 = scmp.lt.s32.totalorder %s62_s17, %s62_s17 }
  0x14   :  { %p1013_p5 = scmp.ne.s32.totalorder %s62_s17, %s1012_s20  ;;  %p1018_p7 = scmp.lt.s32.totalorder %s1012_s20, %s1012_s20 }
  0x16   :  { %p1019_p8 = por %p1018_p7, %p1017_p6 }
  0x18   :  { %p1020_p9 = pnand %p1019_p8, %p1013_p5 }
  0x1a   :  { %1023 = shalt.err (!%p1020_p9)
}
  0x1b   :  { %s1181_s21 = smov 64   ;;  %s1182_s22 = smov 4  }
  0x1c   :  { %67 = dma.hbm_to_vmem [thread:$0]  %s1361_s3, 256, %s62_s17, [#allocation9], %s1181_s21, %s1181_s21, %s1182_s22  }
  0x1d   :  { %s1032_s1 = scalar_lea.vmem %s86_s19, 1024  ;;  %p1037_p11 = scmp.lt.s32.totalorder %s86_s19, %s86_s19 }
  0x1e   :  { %p1033_p10 = scmp.ne.s32.totalorder %s86_s19, %s1032_s1  ;;  %p1038_p12 = scmp.lt.s32.totalorder %s1032_s1, %s1032_s1 }
  0x20   :  { %p1039_p13 = por %p1038_p12, %p1037_p11 }
  0x22   :  { %p1040_p0 = pnand %p1039_p13, %p1033_p10 }
  0x24   :  { %1043 = shalt.err (!%p1040_p0)
}
  0x25   :  { %91 = dma.hbm_to_vmem [thread:$0]  %s1363_s5, 1024, %s86_s19, [#allocation12], %s1181_s21, %s1181_s21, %s1182_s22  }
  0x26   :  { %s1183_s27 = smov [#allocation2]   ;;  %s1184_s29 = smov [#allocation7]  }
  0x27   :  { %s25_s28 = sshll.u32 %s1183_s27, 4  ;;  %s49_s3 = sshll.u32 %s1184_s29, 4  ;;  %s26_s28 = int_to_ptr.vmem [resolvable:$true] %s25_s28  ;;  %s50_s3 = int_to_ptr.vmem [resolvable:$true] %s49_s3 }
  0x28   :  { %s1052_s30 = scalar_lea.vmem %s26_s28, 256  ;;  %p1057_p2 = scmp.lt.s32.totalorder %s26_s28, %s26_s28 }
  0x29   :  { %p1053_p1 = scmp.ne.s32.totalorder %s26_s28, %s1052_s30  ;;  %p1058_p3 = scmp.lt.s32.totalorder %s1052_s30, %s1052_s30 }
  0x2b   :  { %p1059_p4 = por %p1058_p3, %p1057_p2 }
  0x2d   :  { %p1060_p5 = pnand %p1059_p4, %p1053_p1 }
  0x2f   :  { %1063 = shalt.err (!%p1060_p5)
}
  0x30   :  { %31 = dma.hbm_to_vmem [thread:$0]  %s1358_s0, 256, %s26_s28, [#allocation3], %s1177_s12, %s1177_s12, %s1178_s13  }
  0x31   :  { %s1072_s5 = scalar_lea.vmem %s50_s3, 256  ;;  %p1077_p7 = scmp.lt.s32.totalorder %s50_s3, %s50_s3 }
  0x32   :  { %p1073_p6 = scmp.ne.s32.totalorder %s50_s3, %s1072_s5  ;;  %p1078_p8 = scmp.lt.s32.totalorder %s1072_s5, %s1072_s5 }
  0x34   :  { %p1079_p9 = por %p1078_p8, %p1077_p7 }
  0x36   :  { %p1080_p10 = pnand %p1079_p9, %p1073_p6 }
  0x38   :  { %1083 = shalt.err (!%p1080_p10)
}
  0x39   :  { %55 = dma.hbm_to_vmem [thread:$0]  %s1360_s2, 256, %s50_s3, [#allocation6], %s1181_s21, %s1181_s21, %s1182_s22  }
  0x3a   :  { %s1185_s16 = smov [#allocation10]   ;;  %s1186_s18 = smov [#allocation13]  }
  0x3b   :  { %s73_s17 = sshll.u32 %s1185_s16, 4  ;;  %s97_s0 = sshll.u32 %s1186_s18, 4  ;;  %s74_s17 = int_to_ptr.vmem [resolvable:$true] %s73_s17  ;;  %s98_s0 = int_to_ptr.vmem [resolvable:$true] %s97_s0 }
  0x3c   :  { %s1092_s19 = scalar_lea.vmem %s74_s17, 1024  ;;  %p1097_p12 = scmp.lt.s32.totalorder %s74_s17, %s74_s17 }
  0x3d   :  { %p1093_p11 = scmp.ne.s32.totalorder %s74_s17, %s1092_s19  ;;  %p1098_p13 = scmp.lt.s32.totalorder %s1092_s19, %s1092_s19 }
  0x3f   :  { %p1099_p0 = por %p1098_p13, %p1097_p12 }
  0x41   :  { %p1100_p1 = pnand %p1099_p0, %p1093_p11 }
  0x43   :  { %1103 = shalt.err (!%p1100_p1)
}
  0x44   :  { %79 = dma.hbm_to_vmem [thread:$0]  %s1362_s4, 1024, %s74_s17, [#allocation9], %s1181_s21, %s1181_s21, %s1182_s22  }
  0x45   :  { %s1112_s2 = scalar_lea.vmem %s98_s0, 1024  ;;  %p1117_p3 = scmp.lt.s32.totalorder %s98_s0, %s98_s0 }
  0x46   :  { %p1113_p2 = scmp.ne.s32.totalorder %s98_s0, %s1112_s2  ;;  %p1118_p4 = scmp.lt.s32.totalorder %s1112_s2, %s1112_s2 }
  0x48   :  { %p1119_p5 = por %p1118_p4, %p1117_p3 }
  0x4a   :  { %p1120_p6 = pnand %p1119_p5, %p1113_p2 }
  0x4c   :  { %1123 = shalt.err (!%p1120_p6)
}
  0x4d   :  { %103 = dma.hbm_to_vmem [thread:$0]  %s1364_s6, 1024, %s98_s0, [#allocation12], %s1181_s21, %s1181_s21, %s1182_s22  }
  0x4e   :  { %s1187_s25 = smov [#allocation14]  }
  0x4f   :  { %s109_s26 = sshll.u32 %s1187_s25, 4  ;;  %s110_s26 = int_to_ptr.vmem [resolvable:$true] %s109_s26 }
  0x50   :  { %s1132_s27 = scalar_lea.vmem %s110_s26, 1024  ;;  %p1137_p8 = scmp.lt.s32.totalorder %s110_s26, %s110_s26 }
  0x51   :  { %p1133_p7 = scmp.ne.s32.totalorder %s110_s26, %s1132_s27  ;;  %p1138_p9 = scmp.lt.s32.totalorder %s1132_s27, %s1132_s27 }
  0x53   :  { %p1139_p10 = por %p1138_p9, %p1137_p8 }
  0x55   :  { %p1140_p11 = pnand %p1139_p10, %p1133_p7 }
  0x57   :  { %1143 = shalt.err (!%p1140_p11)
}
  0x58   :  { %115 = dma.hbm_to_vmem [thread:$0]  %s1365_s7, 1024, %s110_s26, [#allocation15], %s1181_s21, %s1181_s21, %s1182_s22  }
  0x59   :  { %1164 = dma.done.wait [#allocation3], 256  }
  0x5a   :  { %1165 = vsyncadd [#allocation3], 4294967040 }
  0x5b   :  { %1166 = dma.done.wait [#allocation6], 512  }
  0x5c   :  { %1167 = vsyncadd [#allocation6], 4294966784 }
  0x5d   :  { %1168 = dma.done.wait [#allocation9], 1280  }
  0x5e   :  { %1169 = vsyncadd [#allocation9], 4294966016 }
  0x5f   :  { %1170 = dma.done.wait [#allocation12], 2048  }
  0x60   :  { %1171 = vsyncadd [#allocation12], 4294965248 }
  0x61   :  { %1172 = dma.done.wait [#allocation15], 1024  }
  0x62   :  { %1173 = vsyncadd [#allocation15], 4294966272  ;;  %v1188_v0 = vmov 0.0   ;;  %vm1189_vm0 = vmmov 0   ;;  %v948_v1 = vld [vmem:[#allocation8 + $0x8] sm:$0xff]   ;;  %v949_v2 = vld [vmem:[#allocation7 + $0x8] sm:$0xff]  }
  0x63   :  { %837 = vmatprep.subr.bf16.mxu0 %v1188_v0  ;;  %845 = vmatprep.subr.bf16.mxu1 %v1188_v0  ;;  %v950_v3 = vld [vmem:[#allocation8] sm:$0xff]   ;;  %v951_v4 = vld [vmem:[#allocation7] sm:$0xff]   ;;  %v147_v6 = vld [vmem:[#allocation5 + $0x8] sm:$0xff]  ;;  %vm169_vm1 = vcmask 261120   ;;  %s1190_s14 = smov [#allocation16]  }
  0x64   :  { %841 = vmatprep.mubr.msk.bf16.mxu0 %vm1189_vm0, %v1188_v0  ;;  %849 = vmatprep.mubr.msk.bf16.mxu1 %vm1189_vm0, %v1188_v0  ;;  %v146_v5 = vld [vmem:[#allocation5] sm:$0xff]  ;;  %v143_v7 = vld [vmem:[#allocation2] sm:$0xff]  ;;  %v144_v9 = vld [vmem:[#allocation2 + $0x8] sm:$0xff]  ;;  %s736_s15 = sshll.u32 %s1190_s14, 4  ;;  %s737_s15 = int_to_ptr.vmem [resolvable:$true] %s736_s15 }
  0x65   :  { %838 = vmatpush3.bf16.msra.mxu0 %v948_v1  ;;  %846 = vmatpush3.bf16.msra.mxu1 %v949_v2  ;;  %v148_v8 = vpack.c.bf16 %v147_v6, %v146_v5  ;;  %v145_v10 = vpack.c.bf16 %v144_v9, %v143_v7  ;;  %v952_v11 = vld [vmem:[#allocation10 + $0x38] sm:$0xff]   ;;  %v953_v12 = vld [vmem:[#allocation10 + $0x30] sm:$0xff]   ;;  %v954_v13 = vld [vmem:[#allocation10 + $0x28] sm:$0xff]   ;;  %s1144_s16 = scalar_lea.vmem %s737_s15, 256  ;;  %p1149_p13 = scmp.lt.s32.totalorder %s737_s15, %s737_s15 }
  0x66   :  { %839 = vmatprep.subr.bf16.mxu0 %v1188_v0  ;;  %847 = vmatprep.subr.bf16.mxu1 %v1188_v0  ;;  %v955_v14 = vld [vmem:[#allocation10 + $0x20] sm:$0xff]   ;;  %v956_v15 = vld [vmem:[#allocation10 + $0x18] sm:$0xff]   ;;  %v957_v16 = vld [vmem:[#allocation10 + $0x10] sm:$0xff]   ;;  %p1145_p12 = scmp.ne.s32.totalorder %s737_s15, %s1144_s16  ;;  %p1150_p0 = scmp.lt.s32.totalorder %s1144_s16, %s1144_s16 }
  0x67   :  { %v958_v17 = vld [vmem:[#allocation10 + $0x8] sm:$0xff]   ;;  %v959_v18 = vld [vmem:[#allocation10] sm:$0xff]   ;;  %v960_v19 = vld [vmem:[#allocation11 + $0x38] sm:$0xff]  }
  0x68   :  { %v961_v20 = vld [vmem:[#allocation11 + $0x30] sm:$0xff]   ;;  %v962_v21 = vld [vmem:[#allocation11 + $0x28] sm:$0xff]   ;;  %v963_v22 = vld [vmem:[#allocation11 + $0x20] sm:$0xff]   ;;  %p1151_p1 = por %p1150_p0, %p1149_p13 }
  0x69   :  { %840 = vmatpush3.bf16.msra.mxu0 %v950_v3  ;;  %848 = vmatpush3.bf16.msra.mxu1 %v951_v4  ;;  %v964_v23 = vld [vmem:[#allocation11 + $0x18] sm:$0xff]   ;;  %v758_v28 = vld [vmem:[%s1366_s8] ss:$0 sm:$0xff]  ;;  %v965_v40 = vld [vmem:[#allocation11 + $0x10] sm:$0xff]  }
  0x6a   :  { %853 = vmatprep.subr.bf16.mxu0 %v1188_v0  ;;  %873 = vmatprep.subr.bf16.mxu1 %v1188_v0  ;;  %v966_v41 = vld [vmem:[#allocation11 + $0x8] sm:$0xff]   ;;  %v967_v42 = vld [vmem:[#allocation11] sm:$0xff]   ;;  %v968_v43 = vld [vmem:[#allocation13 + $0x38] sm:$0xff]   ;;  %p1152_p2 = pnand %p1151_p1, %p1145_p12 }
  0x6b   :  { %v969_v44 = vld [vmem:[#allocation13 + $0x30] sm:$0xff]   ;;  %v970_v45 = vld [vmem:[#allocation13 + $0x28] sm:$0xff]   ;;  %v971_v46 = vld [vmem:[#allocation13 + $0x20] sm:$0xff]  }
  0x6c   :  { %842 = vmatmul.mubr.msk.bf16.vlgmr.msra.gmra.mxu0 %vm169_vm1, %v148_v8  ;;  %850 = vmatmul.mubr.msk.bf16.vlgmr.msra.gmra.mxu1 %vm169_vm1, %v145_v10  ;;  %v972_v47 = vld [vmem:[#allocation13 + $0x18] sm:$0xff]   ;;  %v759_v48 = vld [vmem:[%s1366_s8 + $0x1] ss:$0 sm:$0xff]  ;;  %v973_v58 = vld [vmem:[#allocation13 + $0x10] sm:$0xff]  }
  0x6d   :  { %854 = vmatpush3.bf16.msra.mxu0 %v952_v11  ;;  %869 = vmatprep.mubr.msk.bf16.mxu0 %vm1189_vm0, %v1188_v0  ;;  %v974_v59 = vld [vmem:[#allocation13 + $0x8] sm:$0xff]   ;;  %v975_v60 = vld [vmem:[#allocation13] sm:$0xff]   ;;  %v976_v61 = vld [vmem:[#allocation14 + $0x38] sm:$0xff]  }
  0x6e   :  { %855 = vmatprep.subr.bf16.mxu0 %v1188_v0  ;;  %889 = vmatprep.mubr.msk.bf16.mxu1 %vm1189_vm0, %v1188_v0  ;;  %v977_v62 = vld [vmem:[#allocation14 + $0x30] sm:$0xff]   ;;  %v978_v63 = vld [vmem:[#allocation14 + $0x28] sm:$0xff]   ;;  %v979_v1 = vld [vmem:[#allocation14 + $0x20] sm:$0xff]  }
  0x6f   :  { %874 = vmatpush3.bf16.msra.mxu1 %v960_v19  ;;  %v980_v2 = vld [vmem:[#allocation14 + $0x18] sm:$0xff]   ;;  %v768_v3 = vld [vmem:[%s1366_s8 + $0x2] ss:$0 sm:$0xff] }
  0x70   :  { %875 = vmatprep.subr.bf16.mxu1 %v1188_v0 }
  0x71   :  { %856 = vmatpush3.bf16.msra.mxu0 %v953_v12 }
  0x72   :  { %857 = vmatprep.subr.bf16.mxu0 %v1188_v0 }
  0x73   :  { %876 = vmatpush3.bf16.msra.mxu1 %v961_v20 }
  0x74   :  { %877 = vmatprep.subr.bf16.mxu1 %v1188_v0 }
  0x75   :  { %858 = vmatpush3.bf16.msra.mxu0 %v954_v13  ;;  %v981_v13 = vld [vmem:[#allocation14 + $0x10] sm:$0xff]  }
  0x76   :  { %859 = vmatprep.subr.bf16.mxu0 %v1188_v0 }
  0x77   :  { %878 = vmatpush3.bf16.msra.mxu1 %v962_v21 }
  0x78   :  { %879 = vmatprep.subr.bf16.mxu1 %v1188_v0 }
  0x79   :  { %860 = vmatpush3.bf16.msra.mxu0 %v955_v14  ;;  %v982_v14 = vld [vmem:[#allocation14 + $0x8] sm:$0xff]  }
  0x7a   :  { %861 = vmatprep.subr.bf16.mxu0 %v1188_v0 }
  0x7b   :  { %880 = vmatpush3.bf16.msra.mxu1 %v963_v22 }
  0x7c   :  { %881 = vmatprep.subr.bf16.mxu1 %v1188_v0 }
  0x7d   :  { %862 = vmatpush3.bf16.msra.mxu0 %v956_v15  ;;  %v983_v15 = vld [vmem:[#allocation14] sm:$0xff]  }
  0x7e   :  { %863 = vmatprep.subr.bf16.mxu0 %v1188_v0 }
  0x7f   :  { %882 = vmatpush3.bf16.msra.mxu1 %v964_v23 }
  0x80   :  { %883 = vmatprep.subr.bf16.mxu1 %v1188_v0 }
  0x81   :  { %864 = vmatpush3.bf16.msra.mxu0 %v957_v16  ;;  %v777_v16 = vld [vmem:[%s1366_s8 + $0x3] ss:$0 sm:$0xff] }
  0x82   :  { %865 = vmatprep.subr.bf16.mxu0 %v1188_v0 }
  0x83   :  { %884 = vmatpush3.bf16.msra.mxu1 %v965_v40 }
  0x84   :  { %885 = vmatprep.subr.bf16.mxu1 %v1188_v0 }
  0x85   :  { %866 = vmatpush3.bf16.msra.mxu0 %v958_v17 }
  0x86   :  { %867 = vmatprep.subr.bf16.mxu0 %v1188_v0 }
  0x87   :  { %886 = vmatpush3.bf16.msra.mxu1 %v966_v41 }
  0x88   :  { %887 = vmatprep.subr.bf16.mxu1 %v1188_v0 }
  0x89   :  { %868 = vmatpush3.bf16.msra.mxu0 %v959_v18 }
  0x8a   :  { %893 = vmatprep.subr.bf16.mxu0 %v1188_v0 }
  0x8b   :  { %888 = vmatpush3.bf16.msra.mxu1 %v967_v42 }
  0x8c   :  { %913 = vmatprep.subr.bf16.mxu1 %v1188_v0 }
 0x12c   :  { %v207_v24 = vpop.f32.mrf.mxu0  ;;  %v263_v25 = vpop.f32.mrf.mxu1 }
 0x12d   :  { %v264_v26 = vadd.f32 %v263_v25, %v207_v24 }
 0x12e   :  { %v843_v27 = vpop.f32.mrf.mxu0  ;;  %v851_v29 = vpop.f32.mrf.mxu1 }
 0x12f   :  { %v275_v32 = vadd.f32 %v758_v28, %v264_v26 }
 0x130   :  { %v210_v30 = vpop.f32.mrf.mxu0  ;;  %v266_v31 = vpop.f32.mrf.mxu1 }
 0x131   :  { %v267_v33 = vadd.f32 %v266_v31, %v210_v30  ;;  %v277_v37 = vmax.f32 %v275_v32, 0.0 }
 0x132   :  { %v844_v34 = vpop.f32.mrf.mxu0  ;;  %v852_v35 = vpop.f32.mrf.mxu1 }
 0x133   :  { %v276_v36 = vadd.f32 %v758_v28, %v267_v33 }
 0x135   :  { %v278_v38 = vmax.f32 %v276_v36, 0.0 }
 0x137   :  { %v279_v39 = vpack.c.bf16 %v278_v38, %v277_v37 }
 0x139   :  { %870 = vmatmul.mubr.bf16.vlgmr.msra.gmra.mxu0 %v279_v39 }
 0x13a   :  { %909 = vmatprep.mubr.msk.bf16.mxu0 %vm1189_vm0, %v1188_v0  ;;  %894 = vmatpush3.bf16.msra.mxu0 %v968_v43 }
 0x13b   :  { %895 = vmatprep.subr.bf16.mxu0 %v1188_v0 }
 0x13e   :  { %896 = vmatpush3.bf16.msra.mxu0 %v969_v44 }
 0x13f   :  { %897 = vmatprep.subr.bf16.mxu0 %v1188_v0 }
 0x142   :  { %898 = vmatpush3.bf16.msra.mxu0 %v970_v45 }
 0x143   :  { %899 = vmatprep.subr.bf16.mxu0 %v1188_v0 }
 0x146   :  { %900 = vmatpush3.bf16.msra.mxu0 %v971_v46 }
 0x147   :  { %901 = vmatprep.subr.bf16.mxu0 %v1188_v0 }
 0x14a   :  { %902 = vmatpush3.bf16.msra.mxu0 %v972_v47 }
 0x14b   :  { %903 = vmatprep.subr.bf16.mxu0 %v1188_v0 }
 0x14e   :  { %904 = vmatpush3.bf16.msra.mxu0 %v973_v58 }
 0x14f   :  { %905 = vmatprep.subr.bf16.mxu0 %v1188_v0 }
 0x152   :  { %906 = vmatpush3.bf16.msra.mxu0 %v974_v59 }
 0x153   :  { %907 = vmatprep.subr.bf16.mxu0 %v1188_v0 }
 0x156   :  { %908 = vmatpush3.bf16.msra.mxu0 %v975_v60 }
 0x1f9   :  { %v383_v49 = vpop.f32.mrf.mxu0 }
 0x1fa   :  { %v384_v51 = vadd.f32 %v759_v48, %v383_v49 }
 0x1fb   :  { %v871_v50 = vpop.f32.mrf.mxu0 }
 0x1fc   :  { %v390_v55 = vmax.f32 %v384_v51, 0.0 }
 0x1fd   :  { %v386_v52 = vpop.f32.mrf.mxu0 }
 0x1fe   :  { %v387_v53 = vadd.f32 %v759_v48, %v386_v52 }
 0x1ff   :  { %v872_v54 = vpop.f32.mrf.mxu0 }
 0x200   :  { %v391_v56 = vmax.f32 %v387_v53, 0.0 }
 0x202   :  { %v392_v57 = vpack.c.bf16 %v391_v56, %v390_v55 }
 0x204   :  { %890 = vmatmul.mubr.bf16.vlgmr.msra.gmra.mxu1 %v392_v57 }
 0x205   :  { %929 = vmatprep.mubr.msk.bf16.mxu1 %vm1189_vm0, %v1188_v0  ;;  %914 = vmatpush3.bf16.msra.mxu1 %v976_v61 }
 0x206   :  { %915 = vmatprep.subr.bf16.mxu1 %v1188_v0 }
 0x209   :  { %916 = vmatpush3.bf16.msra.mxu1 %v977_v62 }
 0x20a   :  { %917 = vmatprep.subr.bf16.mxu1 %v1188_v0 }
 0x20d   :  { %918 = vmatpush3.bf16.msra.mxu1 %v978_v63 }
 0x20e   :  { %919 = vmatprep.subr.bf16.mxu1 %v1188_v0 }
 0x211   :  { %920 = vmatpush3.bf16.msra.mxu1 %v979_v1 }
 0x212   :  { %921 = vmatprep.subr.bf16.mxu1 %v1188_v0 }
 0x215   :  { %922 = vmatpush3.bf16.msra.mxu1 %v980_v2 }
 0x216   :  { %923 = vmatprep.subr.bf16.mxu1 %v1188_v0 }
 0x219   :  { %924 = vmatpush3.bf16.msra.mxu1 %v981_v13 }
 0x21a   :  { %925 = vmatprep.subr.bf16.mxu1 %v1188_v0 }
 0x21d   :  { %926 = vmatpush3.bf16.msra.mxu1 %v982_v14 }
 0x21e   :  { %927 = vmatprep.subr.bf16.mxu1 %v1188_v0  ;;  %v786_v0 = vld [vmem:[%s1366_s8 + $0x4] ss:$0 sm:$0xff] }
 0x221   :  { %928 = vmatpush3.bf16.msra.mxu1 %v983_v15 }
 0x2c4   :  { %v496_v4 = vpop.f32.mrf.mxu1 }
 0x2c5   :  { %v497_v6 = vadd.f32 %v768_v3, %v496_v4 }
 0x2c6   :  { %v891_v5 = vpop.f32.mrf.mxu1 }
 0x2c7   :  { %v503_v10 = vmax.f32 %v497_v6, 0.0 }
 0x2c8   :  { %v499_v7 = vpop.f32.mrf.mxu1 }
 0x2c9   :  { %v500_v8 = vadd.f32 %v768_v3, %v499_v7 }
 0x2ca   :  { %v892_v9 = vpop.f32.mrf.mxu1 }
 0x2cb   :  { %v504_v11 = vmax.f32 %v500_v8, 0.0 }
 0x2cd   :  { %v505_v12 = vpack.c.bf16 %v504_v11, %v503_v10 }
 0x2cf   :  { %910 = vmatmul.mubr.bf16.vlgmr.msra.gmra.mxu0 %v505_v12 }
 0x38f   :  { %v609_v17 = vpop.f32.mrf.mxu0 }
 0x390   :  { %v610_v19 = vadd.f32 %v777_v16, %v609_v17 }
 0x391   :  { %v911_v18 = vpop.f32.mrf.mxu0 }
 0x392   :  { %v616_v23 = vmax.f32 %v610_v19, 0.0 }
 0x393   :  { %v612_v20 = vpop.f32.mrf.mxu0 }
 0x394   :  { %v613_v21 = vadd.f32 %v777_v16, %v612_v20 }
 0x395   :  { %v912_v22 = vpop.f32.mrf.mxu0 }
 0x396   :  { %v617_v24 = vmax.f32 %v613_v21, 0.0 }
 0x398   :  { %v618_v25 = vpack.c.bf16 %v617_v24, %v616_v23 }
 0x39a   :  { %930 = vmatmul.mubr.bf16.vlgmr.msra.gmra.mxu1 %v618_v25 }
 0x45a   :  { %v722_v26 = vpop.f32.mrf.mxu1 }
 0x45b   :  { %v723_v27 = vadd.f32 %v786_v0, %v722_v26 }
 0x45c   :  { %v931_v28 = vpop.f32.mrf.mxu1 }
 0x45d   :  { %729 = vst [vmem:[#allocation16] sm:$0xff] %v723_v27 }
 0x45e   :  { %v725_v29 = vpop.f32.mrf.mxu1 }
 0x45f   :  { %v726_v30 = vadd.f32 %v786_v0, %v725_v29 }
 0x460   :  { %v932_v31 = vpop.f32.mrf.mxu1 }
 0x461   :  { %730 = vst [vmem:[#allocation16 + $0x8] sm:$0xff] %v726_v30 }
 0x462   :  { %1155 = shalt.err (!%p1152_p2)
}
 0x463   :  { %742 = dma.vmem_to_hbm [thread:$0]  %s737_s15, 256, %s1367_s9, [#allocation4], %s1177_s12, %s1177_s12, %s1178_s13  }
 0x464   :  { %1174 = dma.done.wait [#allocation4], 256  }
 0x465   :  { %1175 = vsyncadd [#allocation4], 4294967040 }
 0x466   :  { %746 = vsyncpa [#allocation3], 1 }
 0x467   :  { %747 = vsyncpa [#allocation6], 1 }
 0x468   :  { %748 = vsyncpa [#allocation9], 1 }
 0x469   :  { %749 = vsyncpa [#allocation12], 1 }
 0x46a   :  { %750 = vsyncpa [#allocation15], 1 }
 0x46b   :  { %751 = vsyncpa [#allocation4], 1 }

</bundles_post_ra>
